<compile_context>
chip_gen: v7x
topology: tpu7x:2x2x1
jax: 0.10.0
libtpu: 0.0.40
codegen_flags: <defaults>
</compile_context>

<pallas_src>
import functools

import jax
import jax.numpy as jnp
from jax import lax
from jax.experimental import pallas as pl
from jax.experimental.pallas import tpu as pltpu


def _round_up(v, m):
    return ((v + m - 1) // m) * m


def _spatial_attn_kernel(x_ref, w_ref, o_ref, pad_ref, *, C, H, W, K, P, Hp, Wl):
    # x_ref : (C, H, W)    one batch element (N squeezed by the BlockSpec)
    # w_ref : (2*K*K,)     conv weight, flattened, in SMEM (scalar reads)
    # o_ref : (H, W)
    # pad_ref: VMEM scratch (2, Hp, Wl) f32 with Hp % 8 == 0, Wl % 128 == 0,
    #          Hp >= H + P, Wl >= W + P.  The pooled maps occupy the
    #          [0:H, 0:W] corner; the rest stays zero so cyclic rolls
    #          reproduce the conv zero-padding (wrap-around lands in zeros).

    # ---- channel pooling, streamed over C (no full f32 copy of x) ----------
    x0 = x_ref[0].astype(jnp.float32)                     # (H, W)
    if C > 1:
        def body(c, carry):
            s, m = carry
            xc = x_ref[c].astype(jnp.float32)
            return s + xc, jnp.maximum(m, xc)
        s, mx = lax.fori_loop(1, C, body, (x0, x0), unroll=C <= 32)
    else:
        s, mx = x0, x0
    avg = s * jnp.float32(1.0 / C)

    # ---- place pooled maps in the zero-padded, lane-aligned scratch --------
    pad_ref[...] = jnp.zeros_like(pad_ref)                # a few vregs; core-safe
    pad_ref[0, 0:H, 0:W] = avg
    pad_ref[1, 0:H, 0:W] = mx

    # ---- 2->1 channel KxK conv: aligned slab loads + XLU rolls + SMEM scalars
    acc = jnp.zeros((Hp, Wl), dtype=jnp.float32)
    for c in range(2):
        g = pad_ref[c]                                    # (Hp, Wl) aligned load
        for kh in range(K):
            dh = kh - P
            rows = g if dh == 0 else pltpu.roll(g, shift=(-dh) % Hp, axis=0)
            for kw in range(K):
                dw = kw - P
                tap = rows if dw == 0 else pltpu.roll(rows, shift=(-dw) % Wl, axis=1)
                acc = acc + w_ref[c * K * K + kh * K + kw] * tap

    o_ref[...] = jax.nn.sigmoid(acc[0:H, 0:W]).astype(o_ref.dtype)


def spatial_attention(x, weight, kernel_size=7):
    """x: (N, C, H, W);  weight: (1, 2, K, K)  -> (N, 1, H, W)."""
    assert kernel_size in (3, 7), "kernel size must be 3 or 7"
    N, C, H, W = x.shape
    K = kernel_size
    P = 3 if K == 7 else 1
    Hp = _round_up(H + P, 8)        # sublane-aligned padded height
    Wl = _round_up(W + P, 128)      # lane-aligned (lane-dense) padded width
    w_flat = weight.astype(jnp.float32).reshape(2 * K * K)

    kernel = functools.partial(_spatial_attn_kernel, C=C, H=H, W=W, K=K, P=P,
                               Hp=Hp, Wl=Wl)

    itemsize = jnp.dtype(x.dtype).itemsize
    cost = pl.CostEstimate(
        flops=int(N * H * W * (2 * C + 4 * K * K)),
        transcendentals=int(N * H * W),
        bytes_accessed=int(N * C * H * W * itemsize
                           + N * H * W * itemsize
                           + 2 * K * K * 4),
    )

    return pl.pallas_call(
        kernel,
        out_shape=jax.ShapeDtypeStruct((N, 1, H, W), x.dtype),
        grid_spec=pltpu.PrefetchScalarGridSpec(
            num_scalar_prefetch=0,
            grid=(N,),
            in_specs=[
                pl.BlockSpec((None, C, H, W), lambda n: (n, 0, 0, 0)),
                pl.BlockSpec(memory_space=pltpu.MemorySpace.SMEM),
            ],
            out_specs=pl.BlockSpec((None, None, H, W), lambda n: (n, 0, 0, 0)),
            scratch_shapes=[pltpu.VMEM((2, Hp, Wl), jnp.float32)],
        ),
        compiler_params=pltpu.CompilerParams(
            dimension_semantics=("parallel",)),
        cost_estimate=cost,
    )(x, w_flat)


def _reference(x, weight, kernel_size=7):
    P = 3 if kernel_size == 7 else 1
    avg = jnp.mean(x, axis=1, keepdims=True)
    mx = jnp.max(x, axis=1, keepdims=True)
    feat = jnp.concatenate([avg, mx], axis=1)
    y = lax.conv_general_dilated(
        feat, weight, window_strides=(1, 1), padding=[(P, P), (P, P)],
        dimension_numbers=("NCHW", "OIHW", "NCHW"))
    return jax.nn.sigmoid(y)


if __name__ == "__main__":
    key = jax.random.PRNGKey(0)
    kx, kw = jax.random.split(key)

    N, C, H, W = 2, 4, 16, 16
    K = 7
    x = jax.random.normal(kx, (N, C, H, W), dtype=jnp.float32)
    # Deterministic synthetic conv weight, shape (out=1, in=2, K, K), no bias.
    weight = 0.1 * jax.random.normal(kw, (1, 2, K, K), dtype=jnp.float32)

    out = spatial_attention(x, weight, kernel_size=K)
    out = jax.block_until_ready(out)

    ref = _reference(x, weight, kernel_size=K)
    assert out.shape == (N, 1, H, W)
    assert jnp.max(jnp.abs(out - ref)) < 1e-5

    print("KERNEL_OK")
</pallas_src>

<mosaic_0001>
module attributes {stable_mosaic.version = 11 : i64} {
  func.func @_spatial_attn_kernel(%arg0: i32, %arg1: memref<1x4x16x16xf32, #tpu.memory_space<vmem>>, %arg2: memref<98xf32, #tpu.memory_space<smem>>, %arg3: memref<1x1x16x16xf32, #tpu.memory_space<vmem>>, %arg4: memref<2x24x128xf32, #tpu.memory_space<vmem>>) attributes {dimension_semantics = [#tpu.dimension_semantics<parallel>], iteration_bounds = array<i64: 2>, scalar_prefetch = 0 : i64, scratch_operands = 1 : i64, tpu.core_type = #tpu.core_type<tc>, window_params = [{transform_indices = @transform_0, window_bounds = array<i64: 1, 4, 16, 16>}, {transform_indices = @transform_1, window_bounds = array<i64: 98>}, {transform_indices = @transform_2, window_bounds = array<i64: 1, 1, 16, 16>}]} {
    %c0 = arith.constant 0 : index
    %c0_0 = arith.constant 0 : index
    %c0_1 = arith.constant 0 : index
    %c0_2 = arith.constant 0 : index
    %0 = vector.load %arg1[%c0, %c0_0, %c0_1, %c0_2] : memref<1x4x16x16xf32, #tpu.memory_space<vmem>>, vector<1x1x16x16xf32>
    %1 = vector.shape_cast %0 : vector<1x1x16x16xf32> to vector<16x16xf32>
    %c1_i32 = arith.constant 1 : i32
    %c0_3 = arith.constant 0 : index
    %2 = arith.index_cast %c1_i32 : i32 to index
    %c0_4 = arith.constant 0 : index
    %c0_5 = arith.constant 0 : index
    %3 = vector.load %arg1[%c0_3, %2, %c0_4, %c0_5] : memref<1x4x16x16xf32, #tpu.memory_space<vmem>>, vector<1x1x16x16xf32>
    %4 = vector.shape_cast %3 : vector<1x1x16x16xf32> to vector<16x16xf32>
    %5 = arith.addf %1, %4 : vector<16x16xf32>
    %6 = arith.maximumf %1, %4 : vector<16x16xf32>
    %c2_i32 = arith.constant 2 : i32
    %c0_6 = arith.constant 0 : index
    %7 = arith.index_cast %c2_i32 : i32 to index
    %c0_7 = arith.constant 0 : index
    %c0_8 = arith.constant 0 : index
    %8 = vector.load %arg1[%c0_6, %7, %c0_7, %c0_8] : memref<1x4x16x16xf32, #tpu.memory_space<vmem>>, vector<1x1x16x16xf32>
    %9 = vector.shape_cast %8 : vector<1x1x16x16xf32> to vector<16x16xf32>
    %10 = arith.addf %5, %9 : vector<16x16xf32>
    %11 = arith.maximumf %6, %9 : vector<16x16xf32>
    %c3_i32 = arith.constant 3 : i32
    %c0_9 = arith.constant 0 : index
    %12 = arith.index_cast %c3_i32 : i32 to index
    %c0_10 = arith.constant 0 : index
    %c0_11 = arith.constant 0 : index
    %13 = vector.load %arg1[%c0_9, %12, %c0_10, %c0_11] : memref<1x4x16x16xf32, #tpu.memory_space<vmem>>, vector<1x1x16x16xf32>
    %14 = vector.shape_cast %13 : vector<1x1x16x16xf32> to vector<16x16xf32>
    %15 = arith.addf %10, %14 : vector<16x16xf32>
    %16 = arith.maximumf %11, %14 : vector<16x16xf32>
    %c3_i32_12 = arith.constant 3 : i32
    %cst = arith.constant 2.500000e-01 : f32
    %17 = vector.broadcast %cst : f32 to vector<16x16xf32>
    %18 = arith.mulf %15, %17 : vector<16x16xf32>
    %cst_13 = arith.constant 0.000000e+00 : f32
    %19 = vector.broadcast %cst_13 : f32 to vector<2x24x128xf32>
    %c0_14 = arith.constant 0 : index
    %c0_15 = arith.constant 0 : index
    %c0_16 = arith.constant 0 : index
    %20 = vector.load %arg4[%c0_14, %c0_15, %c0_16] : memref<2x24x128xf32, #tpu.memory_space<vmem>>, vector<2x24x128xf32>
    tpu.vector_store %arg4[%c0_14, %c0_15, %c0_16], %19 {strides = array<i32>} : memref<2x24x128xf32, #tpu.memory_space<vmem>>, vector<2x24x128xf32>,
    %c0_17 = arith.constant 0 : index
    %c0_18 = arith.constant 0 : index
    %c0_19 = arith.constant 0 : index
    %21 = vector.load %arg4[%c0_17, %c0_18, %c0_19] : memref<2x24x128xf32, #tpu.memory_space<vmem>>, vector<1x16x16xf32>
    %22 = vector.shape_cast %21 : vector<1x16x16xf32> to vector<16x16xf32>
    %23 = vector.shape_cast %18 : vector<16x16xf32> to vector<1x16x16xf32>
    tpu.vector_store %arg4[%c0_17, %c0_18, %c0_19], %23 {strides = array<i32>} : memref<2x24x128xf32, #tpu.memory_space<vmem>>, vector<1x16x16xf32>,
    %c1 = arith.constant 1 : index
    %c0_20 = arith.constant 0 : index
    %c0_21 = arith.constant 0 : index
    %24 = vector.load %arg4[%c1, %c0_20, %c0_21] : memref<2x24x128xf32, #tpu.memory_space<vmem>>, vector<1x16x16xf32>
    %25 = vector.shape_cast %24 : vector<1x16x16xf32> to vector<16x16xf32>
    %26 = vector.shape_cast %16 : vector<16x16xf32> to vector<1x16x16xf32>
    tpu.vector_store %arg4[%c1, %c0_20, %c0_21], %26 {strides = array<i32>} : memref<2x24x128xf32, #tpu.memory_space<vmem>>, vector<1x16x16xf32>,
    %cst_22 = arith.constant 0.000000e+00 : f32
    %27 = vector.broadcast %cst_22 : f32 to vector<24x128xf32>
    %c0_23 = arith.constant 0 : index
    %c0_24 = arith.constant 0 : index
    %c0_25 = arith.constant 0 : index
    %28 = vector.load %arg4[%c0_23, %c0_24, %c0_25] : memref<2x24x128xf32, #tpu.memory_space<vmem>>, vector<1x24x128xf32>
    %29 = vector.shape_cast %28 : vector<1x24x128xf32> to vector<24x128xf32>
    %c3_i32_26 = arith.constant 3 : i32
    %30 = tpu.dynamic_rotate %29 by %c3_i32_26 dim 0 : vector<24x128xf32>, i32 -> vector<24x128xf32>
    %c3_i32_27 = arith.constant 3 : i32
    %31 = tpu.dynamic_rotate %30 by %c3_i32_27 dim 1 : vector<24x128xf32>, i32 -> vector<24x128xf32>
    %c0_28 = arith.constant 0 : index
    %32 = memref.load %arg2[%c0_28] : memref<98xf32, #tpu.memory_space<smem>>
    %33 = vector.broadcast %32 : f32 to vector<24x128xf32>
    %34 = arith.mulf %33, %31 : vector<24x128xf32>
    %35 = arith.addf %27, %34 : vector<24x128xf32>
    %c2_i32_29 = arith.constant 2 : i32
    %36 = tpu.dynamic_rotate %30 by %c2_i32_29 dim 1 : vector<24x128xf32>, i32 -> vector<24x128xf32>
    %c1_30 = arith.constant 1 : index
    %37 = memref.load %arg2[%c1_30] : memref<98xf32, #tpu.memory_space<smem>>
    %38 = vector.broadcast %37 : f32 to vector<24x128xf32>
    %39 = arith.mulf %38, %36 : vector<24x128xf32>
    %40 = arith.addf %35, %39 : vector<24x128xf32>
    %c1_i32_31 = arith.constant 1 : i32
    %41 = tpu.dynamic_rotate %30 by %c1_i32_31 dim 1 : vector<24x128xf32>, i32 -> vector<24x128xf32>
    %c2 = arith.constant 2 : index
    %42 = memref.load %arg2[%c2] : memref<98xf32, #tpu.memory_space<smem>>
    %43 = vector.broadcast %42 : f32 to vector<24x128xf32>
    %44 = arith.mulf %43, %41 : vector<24x128xf32>
    %45 = arith.addf %40, %44 : vector<24x128xf32>
    %c3 = arith.constant 3 : index
    %46 = memref.load %arg2[%c3] : memref<98xf32, #tpu.memory_space<smem>>
    %47 = vector.broadcast %46 : f32 to vector<24x128xf32>
    %48 = arith.mulf %47, %30 : vector<24x128xf32>
    %49 = arith.addf %45, %48 : vector<24x128xf32>
    %c127_i32 = arith.constant 127 : i32
    %50 = tpu.dynamic_rotate %30 by %c127_i32 dim 1 : vector<24x128xf32>, i32 -> vector<24x128xf32>
    %c4 = arith.constant 4 : index
    %51 = memref.load %arg2[%c4] : memref<98xf32, #tpu.memory_space<smem>>
    %52 = vector.broadcast %51 : f32 to vector<24x128xf32>
    %53 = arith.mulf %52, %50 : vector<24x128xf32>
    %54 = arith.addf %49, %53 : vector<24x128xf32>
    %c126_i32 = arith.constant 126 : i32
    %55 = tpu.dynamic_rotate %30 by %c126_i32 dim 1 : vector<24x128xf32>, i32 -> vector<24x128xf32>
    %c5 = arith.constant 5 : index
    %56 = memref.load %arg2[%c5] : memref<98xf32, #tpu.memory_space<smem>>
    %57 = vector.broadcast %56 : f32 to vector<24x128xf32>
    %58 = arith.mulf %57, %55 : vector<24x128xf32>
    %59 = arith.addf %54, %58 : vector<24x128xf32>
    %c125_i32 = arith.constant 125 : i32
    %60 = tpu.dynamic_rotate %30 by %c125_i32 dim 1 : vector<24x128xf32>, i32 -> vector<24x128xf32>
    %c6 = arith.constant 6 : index
    %61 = memref.load %arg2[%c6] : memref<98xf32, #tpu.memory_space<smem>>
    %62 = vector.broadcast %61 : f32 to vector<24x128xf32>
    %63 = arith.mulf %62, %60 : vector<24x128xf32>
    %64 = arith.addf %59, %63 : vector<24x128xf32>
    %c2_i32_32 = arith.constant 2 : i32
    %65 = tpu.dynamic_rotate %29 by %c2_i32_32 dim 0 : vector<24x128xf32>, i32 -> vector<24x128xf32>
    %c3_i32_33 = arith.constant 3 : i32
    %66 = tpu.dynamic_rotate %65 by %c3_i32_33 dim 1 : vector<24x128xf32>, i32 -> vector<24x128xf32>
    %c7 = arith.constant 7 : index
    %67 = memref.load %arg2[%c7] : memref<98xf32, #tpu.memory_space<smem>>
    %68 = vector.broadcast %67 : f32 to vector<24x128xf32>
    %69 = arith.mulf %68, %66 : vector<24x128xf32>
    %70 = arith.addf %64, %69 : vector<24x128xf32>
    %c2_i32_34 = arith.constant 2 : i32
    %71 = tpu.dynamic_rotate %65 by %c2_i32_34 dim 1 : vector<24x128xf32>, i32 -> vector<24x128xf32>
    %c8 = arith.constant 8 : index
    %72 = memref.load %arg2[%c8] : memref<98xf32, #tpu.memory_space<smem>>
    %73 = vector.broadcast %72 : f32 to vector<24x128xf32>
    %74 = arith.mulf %73, %71 : vector<24x128xf32>
    %75 = arith.addf %70, %74 : vector<24x128xf32>
    %c1_i32_35 = arith.constant 1 : i32
    %76 = tpu.dynamic_rotate %65 by %c1_i32_35 dim 1 : vector<24x128xf32>, i32 -> vector<24x128xf32>
    %c9 = arith.constant 9 : index
    %77 = memref.load %arg2[%c9] : memref<98xf32, #tpu.memory_space<smem>>
    %78 = vector.broadcast %77 : f32 to vector<24x128xf32>
    %79 = arith.mulf %78, %76 : vector<24x128xf32>
    %80 = arith.addf %75, %79 : vector<24x128xf32>
    %c10 = arith.constant 10 : index
    %81 = memref.load %arg2[%c10] : memref<98xf32, #tpu.memory_space<smem>>
    %82 = vector.broadcast %81 : f32 to vector<24x128xf32>
    %83 = arith.mulf %82, %65 : vector<24x128xf32>
    %84 = arith.addf %80, %83 : vector<24x128xf32>
    %c127_i32_36 = arith.constant 127 : i32
    %85 = tpu.dynamic_rotate %65 by %c127_i32_36 dim 1 : vector<24x128xf32>, i32 -> vector<24x128xf32>
    %c11 = arith.constant 11 : index
    %86 = memref.load %arg2[%c11] : memref<98xf32, #tpu.memory_space<smem>>
    %87 = vector.broadcast %86 : f32 to vector<24x128xf32>
    %88 = arith.mulf %87, %85 : vector<24x128xf32>
    %89 = arith.addf %84, %88 : vector<24x128xf32>
    %c126_i32_37 = arith.constant 126 : i32
    %90 = tpu.dynamic_rotate %65 by %c126_i32_37 dim 1 : vector<24x128xf32>, i32 -> vector<24x128xf32>
    %c12 = arith.constant 12 : index
    %91 = memref.load %arg2[%c12] : memref<98xf32, #tpu.memory_space<smem>>
    %92 = vector.broadcast %91 : f32 to vector<24x128xf32>
    %93 = arith.mulf %92, %90 : vector<24x128xf32>
    %94 = arith.addf %89, %93 : vector<24x128xf32>
    %c125_i32_38 = arith.constant 125 : i32
    %95 = tpu.dynamic_rotate %65 by %c125_i32_38 dim 1 : vector<24x128xf32>, i32 -> vector<24x128xf32>
    %c13 = arith.constant 13 : index
    %96 = memref.load %arg2[%c13] : memref<98xf32, #tpu.memory_space<smem>>
    %97 = vector.broadcast %96 : f32 to vector<24x128xf32>
    %98 = arith.mulf %97, %95 : vector<24x128xf32>
    %99 = arith.addf %94, %98 : vector<24x128xf32>
    %c1_i32_39 = arith.constant 1 : i32
    %100 = tpu.dynamic_rotate %29 by %c1_i32_39 dim 0 : vector<24x128xf32>, i32 -> vector<24x128xf32>
    %c3_i32_40 = arith.constant 3 : i32
    %101 = tpu.dynamic_rotate %100 by %c3_i32_40 dim 1 : vector<24x128xf32>, i32 -> vector<24x128xf32>
    %c14 = arith.constant 14 : index
    %102 = memref.load %arg2[%c14] : memref<98xf32, #tpu.memory_space<smem>>
    %103 = vector.broadcast %102 : f32 to vector<24x128xf32>
    %104 = arith.mulf %103, %101 : vector<24x128xf32>
    %105 = arith.addf %99, %104 : vector<24x128xf32>
    %c2_i32_41 = arith.constant 2 : i32
    %106 = tpu.dynamic_rotate %100 by %c2_i32_41 dim 1 : vector<24x128xf32>, i32 -> vector<24x128xf32>
    %c15 = arith.constant 15 : index
    %107 = memref.load %arg2[%c15] : memref<98xf32, #tpu.memory_space<smem>>
    %108 = vector.broadcast %107 : f32 to vector<24x128xf32>
    %109 = arith.mulf %108, %106 : vector<24x128xf32>
    %110 = arith.addf %105, %109 : vector<24x128xf32>
    %c1_i32_42 = arith.constant 1 : i32
    %111 = tpu.dynamic_rotate %100 by %c1_i32_42 dim 1 : vector<24x128xf32>, i32 -> vector<24x128xf32>
    %c16 = arith.constant 16 : index
    %112 = memref.load %arg2[%c16] : memref<98xf32, #tpu.memory_space<smem>>
    %113 = vector.broadcast %112 : f32 to vector<24x128xf32>
    %114 = arith.mulf %113, %111 : vector<24x128xf32>
    %115 = arith.addf %110, %114 : vector<24x128xf32>
    %c17 = arith.constant 17 : index
    %116 = memref.load %arg2[%c17] : memref<98xf32, #tpu.memory_space<smem>>
    %117 = vector.broadcast %116 : f32 to vector<24x128xf32>
    %118 = arith.mulf %117, %100 : vector<24x128xf32>
    %119 = arith.addf %115, %118 : vector<24x128xf32>
    %c127_i32_43 = arith.constant 127 : i32
    %120 = tpu.dynamic_rotate %100 by %c127_i32_43 dim 1 : vector<24x128xf32>, i32 -> vector<24x128xf32>
    %c18 = arith.constant 18 : index
    %121 = memref.load %arg2[%c18] : memref<98xf32, #tpu.memory_space<smem>>
    %122 = vector.broadcast %121 : f32 to vector<24x128xf32>
    %123 = arith.mulf %122, %120 : vector<24x128xf32>
    %124 = arith.addf %119, %123 : vector<24x128xf32>
    %c126_i32_44 = arith.constant 126 : i32
    %125 = tpu.dynamic_rotate %100 by %c126_i32_44 dim 1 : vector<24x128xf32>, i32 -> vector<24x128xf32>
    %c19 = arith.constant 19 : index
    %126 = memref.load %arg2[%c19] : memref<98xf32, #tpu.memory_space<smem>>
    %127 = vector.broadcast %126 : f32 to vector<24x128xf32>
    %128 = arith.mulf %127, %125 : vector<24x128xf32>
    %129 = arith.addf %124, %128 : vector<24x128xf32>
    %c125_i32_45 = arith.constant 125 : i32
    %130 = tpu.dynamic_rotate %100 by %c125_i32_45 dim 1 : vector<24x128xf32>, i32 -> vector<24x128xf32>
    %c20 = arith.constant 20 : index
    %131 = memref.load %arg2[%c20] : memref<98xf32, #tpu.memory_space<smem>>
    %132 = vector.broadcast %131 : f32 to vector<24x128xf32>
    %133 = arith.mulf %132, %130 : vector<24x128xf32>
    %134 = arith.addf %129, %133 : vector<24x128xf32>
    %c3_i32_46 = arith.constant 3 : i32
    %135 = tpu.dynamic_rotate %29 by %c3_i32_46 dim 1 : vector<24x128xf32>, i32 -> vector<24x128xf32>
    %c21 = arith.constant 21 : index
    %136 = memref.load %arg2[%c21] : memref<98xf32, #tpu.memory_space<smem>>
    %137 = vector.broadcast %136 : f32 to vector<24x128xf32>
    %138 = arith.mulf %137, %135 : vector<24x128xf32>
    %139 = arith.addf %134, %138 : vector<24x128xf32>
    %c2_i32_47 = arith.constant 2 : i32
    %140 = tpu.dynamic_rotate %29 by %c2_i32_47 dim 1 : vector<24x128xf32>, i32 -> vector<24x128xf32>
    %c22 = arith.constant 22 : index
    %141 = memref.load %arg2[%c22] : memref<98xf32, #tpu.memory_space<smem>>
    %142 = vector.broadcast %141 : f32 to vector<24x128xf32>
    %143 = arith.mulf %142, %140 : vector<24x128xf32>
    %144 = arith.addf %139, %143 : vector<24x128xf32>
    %c1_i32_48 = arith.constant 1 : i32
    %145 = tpu.dynamic_rotate %29 by %c1_i32_48 dim 1 : vector<24x128xf32>, i32 -> vector<24x128xf32>
    %c23 = arith.constant 23 : index
    %146 = memref.load %arg2[%c23] : memref<98xf32, #tpu.memory_space<smem>>
    %147 = vector.broadcast %146 : f32 to vector<24x128xf32>
    %148 = arith.mulf %147, %145 : vector<24x128xf32>
    %149 = arith.addf %144, %148 : vector<24x128xf32>
    %c24 = arith.constant 24 : index
    %150 = memref.load %arg2[%c24] : memref<98xf32, #tpu.memory_space<smem>>
    %151 = vector.broadcast %150 : f32 to vector<24x128xf32>
    %152 = arith.mulf %151, %29 : vector<24x128xf32>
    %153 = arith.addf %149, %152 : vector<24x128xf32>
    %c127_i32_49 = arith.constant 127 : i32
    %154 = tpu.dynamic_rotate %29 by %c127_i32_49 dim 1 : vector<24x128xf32>, i32 -> vector<24x128xf32>
    %c25 = arith.constant 25 : index
    %155 = memref.load %arg2[%c25] : memref<98xf32, #tpu.memory_space<smem>>
    %156 = vector.broadcast %155 : f32 to vector<24x128xf32>
    %157 = arith.mulf %156, %154 : vector<24x128xf32>
    %158 = arith.addf %153, %157 : vector<24x128xf32>
    %c126_i32_50 = arith.constant 126 : i32
    %159 = tpu.dynamic_rotate %29 by %c126_i32_50 dim 1 : vector<24x128xf32>, i32 -> vector<24x128xf32>
    %c26 = arith.constant 26 : index
    %160 = memref.load %arg2[%c26] : memref<98xf32, #tpu.memory_space<smem>>
    %161 = vector.broadcast %160 : f32 to vector<24x128xf32>
    %162 = arith.mulf %161, %159 : vector<24x128xf32>
    %163 = arith.addf %158, %162 : vector<24x128xf32>
    %c125_i32_51 = arith.constant 125 : i32
    %164 = tpu.dynamic_rotate %29 by %c125_i32_51 dim 1 : vector<24x128xf32>, i32 -> vector<24x128xf32>
    %c27 = arith.constant 27 : index
    %165 = memref.load %arg2[%c27] : memref<98xf32, #tpu.memory_space<smem>>
    %166 = vector.broadcast %165 : f32 to vector<24x128xf32>
    %167 = arith.mulf %166, %164 : vector<24x128xf32>
    %168 = arith.addf %163, %167 : vector<24x128xf32>
    %c23_i32 = arith.constant 23 : i32
    %169 = tpu.dynamic_rotate %29 by %c23_i32 dim 0 : vector<24x128xf32>, i32 -> vector<24x128xf32>
    %c3_i32_52 = arith.constant 3 : i32
    %170 = tpu.dynamic_rotate %169 by %c3_i32_52 dim 1 : vector<24x128xf32>, i32 -> vector<24x128xf32>
    %c28 = arith.constant 28 : index
    %171 = memref.load %arg2[%c28] : memref<98xf32, #tpu.memory_space<smem>>
    %172 = vector.broadcast %171 : f32 to vector<24x128xf32>
    %173 = arith.mulf %172, %170 : vector<24x128xf32>
    %174 = arith.addf %168, %173 : vector<24x128xf32>
    %c2_i32_53 = arith.constant 2 : i32
    %175 = tpu.dynamic_rotate %169 by %c2_i32_53 dim 1 : vector<24x128xf32>, i32 -> vector<24x128xf32>
    %c29 = arith.constant 29 : index
    %176 = memref.load %arg2[%c29] : memref<98xf32, #tpu.memory_space<smem>>
    %177 = vector.broadcast %176 : f32 to vector<24x128xf32>
    %178 = arith.mulf %177, %175 : vector<24x128xf32>
    %179 = arith.addf %174, %178 : vector<24x128xf32>
    %c1_i32_54 = arith.constant 1 : i32
    %180 = tpu.dynamic_rotate %169 by %c1_i32_54 dim 1 : vector<24x128xf32>, i32 -> vector<24x128xf32>
    %c30 = arith.constant 30 : index
    %181 = memref.load %arg2[%c30] : memref<98xf32, #tpu.memory_space<smem>>
    %182 = vector.broadcast %181 : f32 to vector<24x128xf32>
    %183 = arith.mulf %182, %180 : vector<24x128xf32>
    %184 = arith.addf %179, %183 : vector<24x128xf32>
    %c31 = arith.constant 31 : index
    %185 = memref.load %arg2[%c31] : memref<98xf32, #tpu.memory_space<smem>>
    %186 = vector.broadcast %185 : f32 to vector<24x128xf32>
    %187 = arith.mulf %186, %169 : vector<24x128xf32>
    %188 = arith.addf %184, %187 : vector<24x128xf32>
    %c127_i32_55 = arith.constant 127 : i32
    %189 = tpu.dynamic_rotate %169 by %c127_i32_55 dim 1 : vector<24x128xf32>, i32 -> vector<24x128xf32>
    %c32 = arith.constant 32 : index
    %190 = memref.load %arg2[%c32] : memref<98xf32, #tpu.memory_space<smem>>
    %191 = vector.broadcast %190 : f32 to vector<24x128xf32>
    %192 = arith.mulf %191, %189 : vector<24x128xf32>
    %193 = arith.addf %188, %192 : vector<24x128xf32>
    %c126_i32_56 = arith.constant 126 : i32
    %194 = tpu.dynamic_rotate %169 by %c126_i32_56 dim 1 : vector<24x128xf32>, i32 -> vector<24x128xf32>
    %c33 = arith.constant 33 : index
    %195 = memref.load %arg2[%c33] : memref<98xf32, #tpu.memory_space<smem>>
    %196 = vector.broadcast %195 : f32 to vector<24x128xf32>
    %197 = arith.mulf %196, %194 : vector<24x128xf32>
    %198 = arith.addf %193, %197 : vector<24x128xf32>
    %c125_i32_57 = arith.constant 125 : i32
    %199 = tpu.dynamic_rotate %169 by %c125_i32_57 dim 1 : vector<24x128xf32>, i32 -> vector<24x128xf32>
    %c34 = arith.constant 34 : index
    %200 = memref.load %arg2[%c34] : memref<98xf32, #tpu.memory_space<smem>>
    %201 = vector.broadcast %200 : f32 to vector<24x128xf32>
    %202 = arith.mulf %201, %199 : vector<24x128xf32>
    %203 = arith.addf %198, %202 : vector<24x128xf32>
    %c22_i32 = arith.constant 22 : i32
    %204 = tpu.dynamic_rotate %29 by %c22_i32 dim 0 : vector<24x128xf32>, i32 -> vector<24x128xf32>
    %c3_i32_58 = arith.constant 3 : i32
    %205 = tpu.dynamic_rotate %204 by %c3_i32_58 dim 1 : vector<24x128xf32>, i32 -> vector<24x128xf32>
    %c35 = arith.constant 35 : index
    %206 = memref.load %arg2[%c35] : memref<98xf32, #tpu.memory_space<smem>>
    %207 = vector.broadcast %206 : f32 to vector<24x128xf32>
    %208 = arith.mulf %207, %205 : vector<24x128xf32>
    %209 = arith.addf %203, %208 : vector<24x128xf32>
    %c2_i32_59 = arith.constant 2 : i32
    %210 = tpu.dynamic_rotate %204 by %c2_i32_59 dim 1 : vector<24x128xf32>, i32 -> vector<24x128xf32>
    %c36 = arith.constant 36 : index
    %211 = memref.load %arg2[%c36] : memref<98xf32, #tpu.memory_space<smem>>
    %212 = vector.broadcast %211 : f32 to vector<24x128xf32>
    %213 = arith.mulf %212, %210 : vector<24x128xf32>
    %214 = arith.addf %209, %213 : vector<24x128xf32>
    %c1_i32_60 = arith.constant 1 : i32
    %215 = tpu.dynamic_rotate %204 by %c1_i32_60 dim 1 : vector<24x128xf32>, i32 -> vector<24x128xf32>
    %c37 = arith.constant 37 : index
    %216 = memref.load %arg2[%c37] : memref<98xf32, #tpu.memory_space<smem>>
    %217 = vector.broadcast %216 : f32 to vector<24x128xf32>
    %218 = arith.mulf %217, %215 : vector<24x128xf32>
    %219 = arith.addf %214, %218 : vector<24x128xf32>
    %c38 = arith.constant 38 : index
    %220 = memref.load %arg2[%c38] : memref<98xf32, #tpu.memory_space<smem>>
    %221 = vector.broadcast %220 : f32 to vector<24x128xf32>
    %222 = arith.mulf %221, %204 : vector<24x128xf32>
    %223 = arith.addf %219, %222 : vector<24x128xf32>
    %c127_i32_61 = arith.constant 127 : i32
    %224 = tpu.dynamic_rotate %204 by %c127_i32_61 dim 1 : vector<24x128xf32>, i32 -> vector<24x128xf32>
    %c39 = arith.constant 39 : index
    %225 = memref.load %arg2[%c39] : memref<98xf32, #tpu.memory_space<smem>>
    %226 = vector.broadcast %225 : f32 to vector<24x128xf32>
    %227 = arith.mulf %226, %224 : vector<24x128xf32>
    %228 = arith.addf %223, %227 : vector<24x128xf32>
    %c126_i32_62 = arith.constant 126 : i32
    %229 = tpu.dynamic_rotate %204 by %c126_i32_62 dim 1 : vector<24x128xf32>, i32 -> vector<24x128xf32>
    %c40 = arith.constant 40 : index
    %230 = memref.load %arg2[%c40] : memref<98xf32, #tpu.memory_space<smem>>
    %231 = vector.broadcast %230 : f32 to vector<24x128xf32>
    %232 = arith.mulf %231, %229 : vector<24x128xf32>
    %233 = arith.addf %228, %232 : vector<24x128xf32>
    %c125_i32_63 = arith.constant 125 : i32
    %234 = tpu.dynamic_rotate %204 by %c125_i32_63 dim 1 : vector<24x128xf32>, i32 -> vector<24x128xf32>
    %c41 = arith.constant 41 : index
    %235 = memref.load %arg2[%c41] : memref<98xf32, #tpu.memory_space<smem>>
    %236 = vector.broadcast %235 : f32 to vector<24x128xf32>
    %237 = arith.mulf %236, %234 : vector<24x128xf32>
    %238 = arith.addf %233, %237 : vector<24x128xf32>
    %c21_i32 = arith.constant 21 : i32
    %239 = tpu.dynamic_rotate %29 by %c21_i32 dim 0 : vector<24x128xf32>, i32 -> vector<24x128xf32>
    %c3_i32_64 = arith.constant 3 : i32
    %240 = tpu.dynamic_rotate %239 by %c3_i32_64 dim 1 : vector<24x128xf32>, i32 -> vector<24x128xf32>
    %c42 = arith.constant 42 : index
    %241 = memref.load %arg2[%c42] : memref<98xf32, #tpu.memory_space<smem>>
    %242 = vector.broadcast %241 : f32 to vector<24x128xf32>
    %243 = arith.mulf %242, %240 : vector<24x128xf32>
    %244 = arith.addf %238, %243 : vector<24x128xf32>
    %c2_i32_65 = arith.constant 2 : i32
    %245 = tpu.dynamic_rotate %239 by %c2_i32_65 dim 1 : vector<24x128xf32>, i32 -> vector<24x128xf32>
    %c43 = arith.constant 43 : index
    %246 = memref.load %arg2[%c43] : memref<98xf32, #tpu.memory_space<smem>>
    %247 = vector.broadcast %246 : f32 to vector<24x128xf32>
    %248 = arith.mulf %247, %245 : vector<24x128xf32>
    %249 = arith.addf %244, %248 : vector<24x128xf32>
    %c1_i32_66 = arith.constant 1 : i32
    %250 = tpu.dynamic_rotate %239 by %c1_i32_66 dim 1 : vector<24x128xf32>, i32 -> vector<24x128xf32>
    %c44 = arith.constant 44 : index
    %251 = memref.load %arg2[%c44] : memref<98xf32, #tpu.memory_space<smem>>
    %252 = vector.broadcast %251 : f32 to vector<24x128xf32>
    %253 = arith.mulf %252, %250 : vector<24x128xf32>
    %254 = arith.addf %249, %253 : vector<24x128xf32>
    %c45 = arith.constant 45 : index
    %255 = memref.load %arg2[%c45] : memref<98xf32, #tpu.memory_space<smem>>
    %256 = vector.broadcast %255 : f32 to vector<24x128xf32>
    %257 = arith.mulf %256, %239 : vector<24x128xf32>
    %258 = arith.addf %254, %257 : vector<24x128xf32>
    %c127_i32_67 = arith.constant 127 : i32
    %259 = tpu.dynamic_rotate %239 by %c127_i32_67 dim 1 : vector<24x128xf32>, i32 -> vector<24x128xf32>
    %c46 = arith.constant 46 : index
    %260 = memref.load %arg2[%c46] : memref<98xf32, #tpu.memory_space<smem>>
    %261 = vector.broadcast %260 : f32 to vector<24x128xf32>
    %262 = arith.mulf %261, %259 : vector<24x128xf32>
    %263 = arith.addf %258, %262 : vector<24x128xf32>
    %c126_i32_68 = arith.constant 126 : i32
    %264 = tpu.dynamic_rotate %239 by %c126_i32_68 dim 1 : vector<24x128xf32>, i32 -> vector<24x128xf32>
    %c47 = arith.constant 47 : index
    %265 = memref.load %arg2[%c47] : memref<98xf32, #tpu.memory_space<smem>>
    %266 = vector.broadcast %265 : f32 to vector<24x128xf32>
    %267 = arith.mulf %266, %264 : vector<24x128xf32>
    %268 = arith.addf %263, %267 : vector<24x128xf32>
    %c125_i32_69 = arith.constant 125 : i32
    %269 = tpu.dynamic_rotate %239 by %c125_i32_69 dim 1 : vector<24x128xf32>, i32 -> vector<24x128xf32>
    %c48 = arith.constant 48 : index
    %270 = memref.load %arg2[%c48] : memref<98xf32, #tpu.memory_space<smem>>
    %271 = vector.broadcast %270 : f32 to vector<24x128xf32>
    %272 = arith.mulf %271, %269 : vector<24x128xf32>
    %273 = arith.addf %268, %272 : vector<24x128xf32>
    %c1_70 = arith.constant 1 : index
    %c0_71 = arith.constant 0 : index
    %c0_72 = arith.constant 0 : index
    %274 = vector.load %arg4[%c1_70, %c0_71, %c0_72] : memref<2x24x128xf32, #tpu.memory_space<vmem>>, vector<1x24x128xf32>
    %275 = vector.shape_cast %274 : vector<1x24x128xf32> to vector<24x128xf32>
    %c3_i32_73 = arith.constant 3 : i32
    %276 = tpu.dynamic_rotate %275 by %c3_i32_73 dim 0 : vector<24x128xf32>, i32 -> vector<24x128xf32>
    %c3_i32_74 = arith.constant 3 : i32
    %277 = tpu.dynamic_rotate %276 by %c3_i32_74 dim 1 : vector<24x128xf32>, i32 -> vector<24x128xf32>
    %c49 = arith.constant 49 : index
    %278 = memref.load %arg2[%c49] : memref<98xf32, #tpu.memory_space<smem>>
    %279 = vector.broadcast %278 : f32 to vector<24x128xf32>
    %280 = arith.mulf %279, %277 : vector<24x128xf32>
    %281 = arith.addf %273, %280 : vector<24x128xf32>
    %c2_i32_75 = arith.constant 2 : i32
    %282 = tpu.dynamic_rotate %276 by %c2_i32_75 dim 1 : vector<24x128xf32>, i32 -> vector<24x128xf32>
    %c50 = arith.constant 50 : index
    %283 = memref.load %arg2[%c50] : memref<98xf32, #tpu.memory_space<smem>>
    %284 = vector.broadcast %283 : f32 to vector<24x128xf32>
    %285 = arith.mulf %284, %282 : vector<24x128xf32>
    %286 = arith.addf %281, %285 : vector<24x128xf32>
    %c1_i32_76 = arith.constant 1 : i32
    %287 = tpu.dynamic_rotate %276 by %c1_i32_76 dim 1 : vector<24x128xf32>, i32 -> vector<24x128xf32>
    %c51 = arith.constant 51 : index
    %288 = memref.load %arg2[%c51] : memref<98xf32, #tpu.memory_space<smem>>
    %289 = vector.broadcast %288 : f32 to vector<24x128xf32>
    %290 = arith.mulf %289, %287 : vector<24x128xf32>
    %291 = arith.addf %286, %290 : vector<24x128xf32>
    %c52 = arith.constant 52 : index
    %292 = memref.load %arg2[%c52] : memref<98xf32, #tpu.memory_space<smem>>
    %293 = vector.broadcast %292 : f32 to vector<24x128xf32>
    %294 = arith.mulf %293, %276 : vector<24x128xf32>
    %295 = arith.addf %291, %294 : vector<24x128xf32>
    %c127_i32_77 = arith.constant 127 : i32
    %296 = tpu.dynamic_rotate %276 by %c127_i32_77 dim 1 : vector<24x128xf32>, i32 -> vector<24x128xf32>
    %c53 = arith.constant 53 : index
    %297 = memref.load %arg2[%c53] : memref<98xf32, #tpu.memory_space<smem>>
    %298 = vector.broadcast %297 : f32 to vector<24x128xf32>
    %299 = arith.mulf %298, %296 : vector<24x128xf32>
    %300 = arith.addf %295, %299 : vector<24x128xf32>
    %c126_i32_78 = arith.constant 126 : i32
    %301 = tpu.dynamic_rotate %276 by %c126_i32_78 dim 1 : vector<24x128xf32>, i32 -> vector<24x128xf32>
    %c54 = arith.constant 54 : index
    %302 = memref.load %arg2[%c54] : memref<98xf32, #tpu.memory_space<smem>>
    %303 = vector.broadcast %302 : f32 to vector<24x128xf32>
    %304 = arith.mulf %303, %301 : vector<24x128xf32>
    %305 = arith.addf %300, %304 : vector<24x128xf32>
    %c125_i32_79 = arith.constant 125 : i32
    %306 = tpu.dynamic_rotate %276 by %c125_i32_79 dim 1 : vector<24x128xf32>, i32 -> vector<24x128xf32>
    %c55 = arith.constant 55 : index
    %307 = memref.load %arg2[%c55] : memref<98xf32, #tpu.memory_space<smem>>
    %308 = vector.broadcast %307 : f32 to vector<24x128xf32>
    %309 = arith.mulf %308, %306 : vector<24x128xf32>
    %310 = arith.addf %305, %309 : vector<24x128xf32>
    %c2_i32_80 = arith.constant 2 : i32
    %311 = tpu.dynamic_rotate %275 by %c2_i32_80 dim 0 : vector<24x128xf32>, i32 -> vector<24x128xf32>
    %c3_i32_81 = arith.constant 3 : i32
    %312 = tpu.dynamic_rotate %311 by %c3_i32_81 dim 1 : vector<24x128xf32>, i32 -> vector<24x128xf32>
    %c56 = arith.constant 56 : index
    %313 = memref.load %arg2[%c56] : memref<98xf32, #tpu.memory_space<smem>>
    %314 = vector.broadcast %313 : f32 to vector<24x128xf32>
    %315 = arith.mulf %314, %312 : vector<24x128xf32>
    %316 = arith.addf %310, %315 : vector<24x128xf32>
    %c2_i32_82 = arith.constant 2 : i32
    %317 = tpu.dynamic_rotate %311 by %c2_i32_82 dim 1 : vector<24x128xf32>, i32 -> vector<24x128xf32>
    %c57 = arith.constant 57 : index
    %318 = memref.load %arg2[%c57] : memref<98xf32, #tpu.memory_space<smem>>
    %319 = vector.broadcast %318 : f32 to vector<24x128xf32>
    %320 = arith.mulf %319, %317 : vector<24x128xf32>
    %321 = arith.addf %316, %320 : vector<24x128xf32>
    %c1_i32_83 = arith.constant 1 : i32
    %322 = tpu.dynamic_rotate %311 by %c1_i32_83 dim 1 : vector<24x128xf32>, i32 -> vector<24x128xf32>
    %c58 = arith.constant 58 : index
    %323 = memref.load %arg2[%c58] : memref<98xf32, #tpu.memory_space<smem>>
    %324 = vector.broadcast %323 : f32 to vector<24x128xf32>
    %325 = arith.mulf %324, %322 : vector<24x128xf32>
    %326 = arith.addf %321, %325 : vector<24x128xf32>
    %c59 = arith.constant 59 : index
    %327 = memref.load %arg2[%c59] : memref<98xf32, #tpu.memory_space<smem>>
    %328 = vector.broadcast %327 : f32 to vector<24x128xf32>
    %329 = arith.mulf %328, %311 : vector<24x128xf32>
    %330 = arith.addf %326, %329 : vector<24x128xf32>
    %c127_i32_84 = arith.constant 127 : i32
    %331 = tpu.dynamic_rotate %311 by %c127_i32_84 dim 1 : vector<24x128xf32>, i32 -> vector<24x128xf32>
    %c60 = arith.constant 60 : index
    %332 = memref.load %arg2[%c60] : memref<98xf32, #tpu.memory_space<smem>>
    %333 = vector.broadcast %332 : f32 to vector<24x128xf32>
    %334 = arith.mulf %333, %331 : vector<24x128xf32>
    %335 = arith.addf %330, %334 : vector<24x128xf32>
    %c126_i32_85 = arith.constant 126 : i32
    %336 = tpu.dynamic_rotate %311 by %c126_i32_85 dim 1 : vector<24x128xf32>, i32 -> vector<24x128xf32>
    %c61 = arith.constant 61 : index
    %337 = memref.load %arg2[%c61] : memref<98xf32, #tpu.memory_space<smem>>
    %338 = vector.broadcast %337 : f32 to vector<24x128xf32>
    %339 = arith.mulf %338, %336 : vector<24x128xf32>
    %340 = arith.addf %335, %339 : vector<24x128xf32>
    %c125_i32_86 = arith.constant 125 : i32
    %341 = tpu.dynamic_rotate %311 by %c125_i32_86 dim 1 : vector<24x128xf32>, i32 -> vector<24x128xf32>
    %c62 = arith.constant 62 : index
    %342 = memref.load %arg2[%c62] : memref<98xf32, #tpu.memory_space<smem>>
    %343 = vector.broadcast %342 : f32 to vector<24x128xf32>
    %344 = arith.mulf %343, %341 : vector<24x128xf32>
    %345 = arith.addf %340, %344 : vector<24x128xf32>
    %c1_i32_87 = arith.constant 1 : i32
    %346 = tpu.dynamic_rotate %275 by %c1_i32_87 dim 0 : vector<24x128xf32>, i32 -> vector<24x128xf32>
    %c3_i32_88 = arith.constant 3 : i32
    %347 = tpu.dynamic_rotate %346 by %c3_i32_88 dim 1 : vector<24x128xf32>, i32 -> vector<24x128xf32>
    %c63 = arith.constant 63 : index
    %348 = memref.load %arg2[%c63] : memref<98xf32, #tpu.memory_space<smem>>
    %349 = vector.broadcast %348 : f32 to vector<24x128xf32>
    %350 = arith.mulf %349, %347 : vector<24x128xf32>
    %351 = arith.addf %345, %350 : vector<24x128xf32>
    %c2_i32_89 = arith.constant 2 : i32
    %352 = tpu.dynamic_rotate %346 by %c2_i32_89 dim 1 : vector<24x128xf32>, i32 -> vector<24x128xf32>
    %c64 = arith.constant 64 : index
    %353 = memref.load %arg2[%c64] : memref<98xf32, #tpu.memory_space<smem>>
    %354 = vector.broadcast %353 : f32 to vector<24x128xf32>
    %355 = arith.mulf %354, %352 : vector<24x128xf32>
    %356 = arith.addf %351, %355 : vector<24x128xf32>
    %c1_i32_90 = arith.constant 1 : i32
    %357 = tpu.dynamic_rotate %346 by %c1_i32_90 dim 1 : vector<24x128xf32>, i32 -> vector<24x128xf32>
    %c65 = arith.constant 65 : index
    %358 = memref.load %arg2[%c65] : memref<98xf32, #tpu.memory_space<smem>>
    %359 = vector.broadcast %358 : f32 to vector<24x128xf32>
    %360 = arith.mulf %359, %357 : vector<24x128xf32>
    %361 = arith.addf %356, %360 : vector<24x128xf32>
    %c66 = arith.constant 66 : index
    %362 = memref.load %arg2[%c66] : memref<98xf32, #tpu.memory_space<smem>>
    %363 = vector.broadcast %362 : f32 to vector<24x128xf32>
    %364 = arith.mulf %363, %346 : vector<24x128xf32>
    %365 = arith.addf %361, %364 : vector<24x128xf32>
    %c127_i32_91 = arith.constant 127 : i32
    %366 = tpu.dynamic_rotate %346 by %c127_i32_91 dim 1 : vector<24x128xf32>, i32 -> vector<24x128xf32>
    %c67 = arith.constant 67 : index
    %367 = memref.load %arg2[%c67] : memref<98xf32, #tpu.memory_space<smem>>
    %368 = vector.broadcast %367 : f32 to vector<24x128xf32>
    %369 = arith.mulf %368, %366 : vector<24x128xf32>
    %370 = arith.addf %365, %369 : vector<24x128xf32>
    %c126_i32_92 = arith.constant 126 : i32
    %371 = tpu.dynamic_rotate %346 by %c126_i32_92 dim 1 : vector<24x128xf32>, i32 -> vector<24x128xf32>
    %c68 = arith.constant 68 : index
    %372 = memref.load %arg2[%c68] : memref<98xf32, #tpu.memory_space<smem>>
    %373 = vector.broadcast %372 : f32 to vector<24x128xf32>
    %374 = arith.mulf %373, %371 : vector<24x128xf32>
    %375 = arith.addf %370, %374 : vector<24x128xf32>
    %c125_i32_93 = arith.constant 125 : i32
    %376 = tpu.dynamic_rotate %346 by %c125_i32_93 dim 1 : vector<24x128xf32>, i32 -> vector<24x128xf32>
    %c69 = arith.constant 69 : index
    %377 = memref.load %arg2[%c69] : memref<98xf32, #tpu.memory_space<smem>>
    %378 = vector.broadcast %377 : f32 to vector<24x128xf32>
    %379 = arith.mulf %378, %376 : vector<24x128xf32>
    %380 = arith.addf %375, %379 : vector<24x128xf32>
    %c3_i32_94 = arith.constant 3 : i32
    %381 = tpu.dynamic_rotate %275 by %c3_i32_94 dim 1 : vector<24x128xf32>, i32 -> vector<24x128xf32>
    %c70 = arith.constant 70 : index
    %382 = memref.load %arg2[%c70] : memref<98xf32, #tpu.memory_space<smem>>
    %383 = vector.broadcast %382 : f32 to vector<24x128xf32>
    %384 = arith.mulf %383, %381 : vector<24x128xf32>
    %385 = arith.addf %380, %384 : vector<24x128xf32>
    %c2_i32_95 = arith.constant 2 : i32
    %386 = tpu.dynamic_rotate %275 by %c2_i32_95 dim 1 : vector<24x128xf32>, i32 -> vector<24x128xf32>
    %c71 = arith.constant 71 : index
    %387 = memref.load %arg2[%c71] : memref<98xf32, #tpu.memory_space<smem>>
    %388 = vector.broadcast %387 : f32 to vector<24x128xf32>
    %389 = arith.mulf %388, %386 : vector<24x128xf32>
    %390 = arith.addf %385, %389 : vector<24x128xf32>
    %c1_i32_96 = arith.constant 1 : i32
    %391 = tpu.dynamic_rotate %275 by %c1_i32_96 dim 1 : vector<24x128xf32>, i32 -> vector<24x128xf32>
    %c72 = arith.constant 72 : index
    %392 = memref.load %arg2[%c72] : memref<98xf32, #tpu.memory_space<smem>>
    %393 = vector.broadcast %392 : f32 to vector<24x128xf32>
    %394 = arith.mulf %393, %391 : vector<24x128xf32>
    %395 = arith.addf %390, %394 : vector<24x128xf32>
    %c73 = arith.constant 73 : index
    %396 = memref.load %arg2[%c73] : memref<98xf32, #tpu.memory_space<smem>>
    %397 = vector.broadcast %396 : f32 to vector<24x128xf32>
    %398 = arith.mulf %397, %275 : vector<24x128xf32>
    %399 = arith.addf %395, %398 : vector<24x128xf32>
    %c127_i32_97 = arith.constant 127 : i32
    %400 = tpu.dynamic_rotate %275 by %c127_i32_97 dim 1 : vector<24x128xf32>, i32 -> vector<24x128xf32>
    %c74 = arith.constant 74 : index
    %401 = memref.load %arg2[%c74] : memref<98xf32, #tpu.memory_space<smem>>
    %402 = vector.broadcast %401 : f32 to vector<24x128xf32>
    %403 = arith.mulf %402, %400 : vector<24x128xf32>
    %404 = arith.addf %399, %403 : vector<24x128xf32>
    %c126_i32_98 = arith.constant 126 : i32
    %405 = tpu.dynamic_rotate %275 by %c126_i32_98 dim 1 : vector<24x128xf32>, i32 -> vector<24x128xf32>
    %c75 = arith.constant 75 : index
    %406 = memref.load %arg2[%c75] : memref<98xf32, #tpu.memory_space<smem>>
    %407 = vector.broadcast %406 : f32 to vector<24x128xf32>
    %408 = arith.mulf %407, %405 : vector<24x128xf32>
    %409 = arith.addf %404, %408 : vector<24x128xf32>
    %c125_i32_99 = arith.constant 125 : i32
    %410 = tpu.dynamic_rotate %275 by %c125_i32_99 dim 1 : vector<24x128xf32>, i32 -> vector<24x128xf32>
    %c76 = arith.constant 76 : index
    %411 = memref.load %arg2[%c76] : memref<98xf32, #tpu.memory_space<smem>>
    %412 = vector.broadcast %411 : f32 to vector<24x128xf32>
    %413 = arith.mulf %412, %410 : vector<24x128xf32>
    %414 = arith.addf %409, %413 : vector<24x128xf32>
    %c23_i32_100 = arith.constant 23 : i32
    %415 = tpu.dynamic_rotate %275 by %c23_i32_100 dim 0 : vector<24x128xf32>, i32 -> vector<24x128xf32>
    %c3_i32_101 = arith.constant 3 : i32
    %416 = tpu.dynamic_rotate %415 by %c3_i32_101 dim 1 : vector<24x128xf32>, i32 -> vector<24x128xf32>
    %c77 = arith.constant 77 : index
    %417 = memref.load %arg2[%c77] : memref<98xf32, #tpu.memory_space<smem>>
    %418 = vector.broadcast %417 : f32 to vector<24x128xf32>
    %419 = arith.mulf %418, %416 : vector<24x128xf32>
    %420 = arith.addf %414, %419 : vector<24x128xf32>
    %c2_i32_102 = arith.constant 2 : i32
    %421 = tpu.dynamic_rotate %415 by %c2_i32_102 dim 1 : vector<24x128xf32>, i32 -> vector<24x128xf32>
    %c78 = arith.constant 78 : index
    %422 = memref.load %arg2[%c78] : memref<98xf32, #tpu.memory_space<smem>>
    %423 = vector.broadcast %422 : f32 to vector<24x128xf32>
    %424 = arith.mulf %423, %421 : vector<24x128xf32>
    %425 = arith.addf %420, %424 : vector<24x128xf32>
    %c1_i32_103 = arith.constant 1 : i32
    %426 = tpu.dynamic_rotate %415 by %c1_i32_103 dim 1 : vector<24x128xf32>, i32 -> vector<24x128xf32>
    %c79 = arith.constant 79 : index
    %427 = memref.load %arg2[%c79] : memref<98xf32, #tpu.memory_space<smem>>
    %428 = vector.broadcast %427 : f32 to vector<24x128xf32>
    %429 = arith.mulf %428, %426 : vector<24x128xf32>
    %430 = arith.addf %425, %429 : vector<24x128xf32>
    %c80 = arith.constant 80 : index
    %431 = memref.load %arg2[%c80] : memref<98xf32, #tpu.memory_space<smem>>
    %432 = vector.broadcast %431 : f32 to vector<24x128xf32>
    %433 = arith.mulf %432, %415 : vector<24x128xf32>
    %434 = arith.addf %430, %433 : vector<24x128xf32>
    %c127_i32_104 = arith.constant 127 : i32
    %435 = tpu.dynamic_rotate %415 by %c127_i32_104 dim 1 : vector<24x128xf32>, i32 -> vector<24x128xf32>
    %c81 = arith.constant 81 : index
    %436 = memref.load %arg2[%c81] : memref<98xf32, #tpu.memory_space<smem>>
    %437 = vector.broadcast %436 : f32 to vector<24x128xf32>
    %438 = arith.mulf %437, %435 : vector<24x128xf32>
    %439 = arith.addf %434, %438 : vector<24x128xf32>
    %c126_i32_105 = arith.constant 126 : i32
    %440 = tpu.dynamic_rotate %415 by %c126_i32_105 dim 1 : vector<24x128xf32>, i32 -> vector<24x128xf32>
    %c82 = arith.constant 82 : index
    %441 = memref.load %arg2[%c82] : memref<98xf32, #tpu.memory_space<smem>>
    %442 = vector.broadcast %441 : f32 to vector<24x128xf32>
    %443 = arith.mulf %442, %440 : vector<24x128xf32>
    %444 = arith.addf %439, %443 : vector<24x128xf32>
    %c125_i32_106 = arith.constant 125 : i32
    %445 = tpu.dynamic_rotate %415 by %c125_i32_106 dim 1 : vector<24x128xf32>, i32 -> vector<24x128xf32>
    %c83 = arith.constant 83 : index
    %446 = memref.load %arg2[%c83] : memref<98xf32, #tpu.memory_space<smem>>
    %447 = vector.broadcast %446 : f32 to vector<24x128xf32>
    %448 = arith.mulf %447, %445 : vector<24x128xf32>
    %449 = arith.addf %444, %448 : vector<24x128xf32>
    %c22_i32_107 = arith.constant 22 : i32
    %450 = tpu.dynamic_rotate %275 by %c22_i32_107 dim 0 : vector<24x128xf32>, i32 -> vector<24x128xf32>
    %c3_i32_108 = arith.constant 3 : i32
    %451 = tpu.dynamic_rotate %450 by %c3_i32_108 dim 1 : vector<24x128xf32>, i32 -> vector<24x128xf32>
    %c84 = arith.constant 84 : index
    %452 = memref.load %arg2[%c84] : memref<98xf32, #tpu.memory_space<smem>>
    %453 = vector.broadcast %452 : f32 to vector<24x128xf32>
    %454 = arith.mulf %453, %451 : vector<24x128xf32>
    %455 = arith.addf %449, %454 : vector<24x128xf32>
    %c2_i32_109 = arith.constant 2 : i32
    %456 = tpu.dynamic_rotate %450 by %c2_i32_109 dim 1 : vector<24x128xf32>, i32 -> vector<24x128xf32>
    %c85 = arith.constant 85 : index
    %457 = memref.load %arg2[%c85] : memref<98xf32, #tpu.memory_space<smem>>
    %458 = vector.broadcast %457 : f32 to vector<24x128xf32>
    %459 = arith.mulf %458, %456 : vector<24x128xf32>
    %460 = arith.addf %455, %459 : vector<24x128xf32>
    %c1_i32_110 = arith.constant 1 : i32
    %461 = tpu.dynamic_rotate %450 by %c1_i32_110 dim 1 : vector<24x128xf32>, i32 -> vector<24x128xf32>
    %c86 = arith.constant 86 : index
    %462 = memref.load %arg2[%c86] : memref<98xf32, #tpu.memory_space<smem>>
    %463 = vector.broadcast %462 : f32 to vector<24x128xf32>
    %464 = arith.mulf %463, %461 : vector<24x128xf32>
    %465 = arith.addf %460, %464 : vector<24x128xf32>
    %c87 = arith.constant 87 : index
    %466 = memref.load %arg2[%c87] : memref<98xf32, #tpu.memory_space<smem>>
    %467 = vector.broadcast %466 : f32 to vector<24x128xf32>
    %468 = arith.mulf %467, %450 : vector<24x128xf32>
    %469 = arith.addf %465, %468 : vector<24x128xf32>
    %c127_i32_111 = arith.constant 127 : i32
    %470 = tpu.dynamic_rotate %450 by %c127_i32_111 dim 1 : vector<24x128xf32>, i32 -> vector<24x128xf32>
    %c88 = arith.constant 88 : index
    %471 = memref.load %arg2[%c88] : memref<98xf32, #tpu.memory_space<smem>>
    %472 = vector.broadcast %471 : f32 to vector<24x128xf32>
    %473 = arith.mulf %472, %470 : vector<24x128xf32>
    %474 = arith.addf %469, %473 : vector<24x128xf32>
    %c126_i32_112 = arith.constant 126 : i32
    %475 = tpu.dynamic_rotate %450 by %c126_i32_112 dim 1 : vector<24x128xf32>, i32 -> vector<24x128xf32>
    %c89 = arith.constant 89 : index
    %476 = memref.load %arg2[%c89] : memref<98xf32, #tpu.memory_space<smem>>
    %477 = vector.broadcast %476 : f32 to vector<24x128xf32>
    %478 = arith.mulf %477, %475 : vector<24x128xf32>
    %479 = arith.addf %474, %478 : vector<24x128xf32>
    %c125_i32_113 = arith.constant 125 : i32
    %480 = tpu.dynamic_rotate %450 by %c125_i32_113 dim 1 : vector<24x128xf32>, i32 -> vector<24x128xf32>
    %c90 = arith.constant 90 : index
    %481 = memref.load %arg2[%c90] : memref<98xf32, #tpu.memory_space<smem>>
    %482 = vector.broadcast %481 : f32 to vector<24x128xf32>
    %483 = arith.mulf %482, %480 : vector<24x128xf32>
    %484 = arith.addf %479, %483 : vector<24x128xf32>
    %c21_i32_114 = arith.constant 21 : i32
    %485 = tpu.dynamic_rotate %275 by %c21_i32_114 dim 0 : vector<24x128xf32>, i32 -> vector<24x128xf32>
    %c3_i32_115 = arith.constant 3 : i32
    %486 = tpu.dynamic_rotate %485 by %c3_i32_115 dim 1 : vector<24x128xf32>, i32 -> vector<24x128xf32>
    %c91 = arith.constant 91 : index
    %487 = memref.load %arg2[%c91] : memref<98xf32, #tpu.memory_space<smem>>
    %488 = vector.broadcast %487 : f32 to vector<24x128xf32>
    %489 = arith.mulf %488, %486 : vector<24x128xf32>
    %490 = arith.addf %484, %489 : vector<24x128xf32>
    %c2_i32_116 = arith.constant 2 : i32
    %491 = tpu.dynamic_rotate %485 by %c2_i32_116 dim 1 : vector<24x128xf32>, i32 -> vector<24x128xf32>
    %c92 = arith.constant 92 : index
    %492 = memref.load %arg2[%c92] : memref<98xf32, #tpu.memory_space<smem>>
    %493 = vector.broadcast %492 : f32 to vector<24x128xf32>
    %494 = arith.mulf %493, %491 : vector<24x128xf32>
    %495 = arith.addf %490, %494 : vector<24x128xf32>
    %c1_i32_117 = arith.constant 1 : i32
    %496 = tpu.dynamic_rotate %485 by %c1_i32_117 dim 1 : vector<24x128xf32>, i32 -> vector<24x128xf32>
    %c93 = arith.constant 93 : index
    %497 = memref.load %arg2[%c93] : memref<98xf32, #tpu.memory_space<smem>>
    %498 = vector.broadcast %497 : f32 to vector<24x128xf32>
    %499 = arith.mulf %498, %496 : vector<24x128xf32>
    %500 = arith.addf %495, %499 : vector<24x128xf32>
    %c94 = arith.constant 94 : index
    %501 = memref.load %arg2[%c94] : memref<98xf32, #tpu.memory_space<smem>>
    %502 = vector.broadcast %501 : f32 to vector<24x128xf32>
    %503 = arith.mulf %502, %485 : vector<24x128xf32>
    %504 = arith.addf %500, %503 : vector<24x128xf32>
    %c127_i32_118 = arith.constant 127 : i32
    %505 = tpu.dynamic_rotate %485 by %c127_i32_118 dim 1 : vector<24x128xf32>, i32 -> vector<24x128xf32>
    %c95 = arith.constant 95 : index
    %506 = memref.load %arg2[%c95] : memref<98xf32, #tpu.memory_space<smem>>
    %507 = vector.broadcast %506 : f32 to vector<24x128xf32>
    %508 = arith.mulf %507, %505 : vector<24x128xf32>
    %509 = arith.addf %504, %508 : vector<24x128xf32>
    %c126_i32_119 = arith.constant 126 : i32
    %510 = tpu.dynamic_rotate %485 by %c126_i32_119 dim 1 : vector<24x128xf32>, i32 -> vector<24x128xf32>
    %c96 = arith.constant 96 : index
    %511 = memref.load %arg2[%c96] : memref<98xf32, #tpu.memory_space<smem>>
    %512 = vector.broadcast %511 : f32 to vector<24x128xf32>
    %513 = arith.mulf %512, %510 : vector<24x128xf32>
    %514 = arith.addf %509, %513 : vector<24x128xf32>
    %c125_i32_120 = arith.constant 125 : i32
    %515 = tpu.dynamic_rotate %485 by %c125_i32_120 dim 1 : vector<24x128xf32>, i32 -> vector<24x128xf32>
    %c97 = arith.constant 97 : index
    %516 = memref.load %arg2[%c97] : memref<98xf32, #tpu.memory_space<smem>>
    %517 = vector.broadcast %516 : f32 to vector<24x128xf32>
    %518 = arith.mulf %517, %515 : vector<24x128xf32>
    %519 = arith.addf %514, %518 : vector<24x128xf32>
    %520 = vector.extract_strided_slice %519 {offsets = [0, 0], sizes = [16, 16], strides = [1, 1]} : vector<24x128xf32> to vector<16x16xf32>
    %521 = arith.negf %520 : vector<16x16xf32>
    %522 = math.exp %521 : vector<16x16xf32>
    %cst_121 = arith.constant 1.000000e+00 : f32
    %523 = vector.broadcast %cst_121 : f32 to vector<16x16xf32>
    %524 = arith.addf %523, %522 : vector<16x16xf32>
    %525 = arith.divf %523, %524 : vector<16x16xf32>
    %c0_122 = arith.constant 0 : index
    %c0_123 = arith.constant 0 : index
    %c0_124 = arith.constant 0 : index
    %c0_125 = arith.constant 0 : index
    %526 = vector.load %arg3[%c0_122, %c0_123, %c0_124, %c0_125] : memref<1x1x16x16xf32, #tpu.memory_space<vmem>>, vector<1x1x16x16xf32>
    %527 = vector.shape_cast %526 : vector<1x1x16x16xf32> to vector<16x16xf32>
    %528 = vector.shape_cast %525 : vector<16x16xf32> to vector<1x1x16x16xf32>
    tpu.vector_store %arg3[%c0_122, %c0_123, %c0_124, %c0_125], %528 {strides = array<i32>} : memref<1x1x16x16xf32, #tpu.memory_space<vmem>>, vector<1x1x16x16xf32>,
    return
  }
  func.func @transform_0(%arg0: i32) -> (i32, i32, i32, i32) {
    %c0_i32 = arith.constant 0 : i32
    %c0_i32_0 = arith.constant 0 : i32
    %c0_i32_1 = arith.constant 0 : i32
    %c0_i32_2 = arith.constant 0 : i32
    return %arg0, %c0_i32, %c0_i32_0, %c0_i32_1 : i32, i32, i32, i32
  }
  func.func @transform_1(%arg0: i32) -> i32 {
    %c0_i32 = arith.constant 0 : i32
    %c0_i32_0 = arith.constant 0 : i32
    return %c0_i32 : i32
  }
  func.func @transform_2(%arg0: i32) -> (i32, i32, i32, i32) {
    %c0_i32 = arith.constant 0 : i32
    %c0_i32_0 = arith.constant 0 : i32
    %c0_i32_1 = arith.constant 0 : i32
    %c0_i32_2 = arith.constant 0 : i32
    return %arg0, %c0_i32, %c0_i32_0, %c0_i32_1 : i32, i32, i32, i32
  }
}

</mosaic_0001>

<bundles_post_ra>
// kernel: tpu_custom_call.1
= control target key start
LH: loop header
LB: loop body
LE: loop exit
PB: predicated region body
PF: predicated region fallthrough
CT: control target
= control target key end

     0   :  { %7 = vsyncpa [#allocation4], 0  ;;  %s2561_s0 = inlined_call_operand.hbm [shape: f32[2,4,16,16], index: 0, kind: input, shape index: {}]   ;;  %s2562_s1 = inlined_call_operand.vmem [shape: f32[98], index: 1, kind: input, shape index: {}]   ;;  %s2563_s2 = inlined_call_operand.hbm [shape: f32[2,1,16,16], index: 2, kind: output, shape index: {}]  }
   0x1   :  { %9 = vsyncpa [#allocation4 + $0x1], 0 }
   0x2   :  { %10 = vsyncpa [#allocation6], 0 }
   0x3   :  { %11 = vsyncpa [#allocation5], 0 }
   0x4   :  { %13 = vsyncpa [#allocation5 + $0x1], 0  ;;  %s1671_s9 = smov 0   ;;  %s1673_s10 = smov 0  }
   0x5   :  { %s1675_s11 = smov 0   ;;  %s1677_s12 = smov 0  }
   0x6 LB: > { %s1692_s13 = sadd.s32 4294967295, %s1640_s12   ;;  %s1324_s14 = sadd.s32 4294967294, %s1640_s12   ;;  %s1640_s12 = sphi %s1677_s12, %s2583_s12   ;;  %s1636_s11 = sphi %s1675_s11, %s2582_s11   ;;  %s1632_s10 = sphi %s1673_s10, %s2581_s10   ;;  %s1628_s9 = sphi %s1671_s9, %s2580_s9  }
   0x7   : > { %s1696_s15 = sadd.s32 1, %s1640_s12   ;;  %s26_s16 = sadd.s32 1, %s1636_s11 }
   0x8   : > { %s23_s17 = ssub.s32 %s1640_s12, %s1696_s15  ;;  %p33_p0 = scmp.ne.s32.totalorder %s1636_s11, %s1632_s10 }
   0x9   : > { %p24_p1 = scmp.eq.s32.totalorder %s23_s17, 0  ;;  %p34_p2 = scmp.eq.s32.totalorder %s1640_s12, 0 }
   0xa   : > { %p39_p3 = scmp.ne.s32.totalorder %s1632_s10, %s1628_s9  ;;  %p2565_p4 = scmp.eq.s32.totalorder %s1692_s13, 0 }
   0xb   : > { %s1708_s18 = scalar_select %p24_p1, %s1636_s11, %s26_s16  }
   0xc   : > { %p1710_p5 = por %p34_p2, %p33_p0  ;;  %p1716_p6 = por %p2565_p4, %p39_p3 }
   0xd   : > { %p84_p7 = scmp.eq.s32.totalorder %s1692_s13, 1  ;;  %p90_p8 = scmp.eq.s32.totalorder %s1324_s14, 1 }
   0xe   : > { %s2568_s20 = scalar_select %p1716_p6, 1, 0 }
   0xf   : > { %p1325_p9 = scmp.ge.s32.totalorder %s1640_s12, 1  ;;  %p97_p10 = scmp.lt.s32.totalorder %s1640_s12, 3 }
  0x10   : > { %p1723_p11 = por %p84_p7, %p33_p0  ;;  %p1727_p12 = por %p90_p8, %p39_p3 }
  0x11   : > { %p1731_p13 = pnand %p1325_p9, %p97_p10  ;;  %s110_s26 = sshll.u32 %s2562_s1, 4  ;;  %s111_s26 = int_to_ptr.vmem [resolvable:$true] %s110_s26 }
  0x12   : > { %s2569_s21 = scalar_select %p1723_p11, 1, 0 }
  0x13   : > { %s2570_s22 = scalar_select %p1727_p12, 1, 0 }
  0x14   : > { %p1455_p1 = pneg %p1731_p13  ;;  %p1468_p2 = scmp.lt.s32.totalorder %s1640_s12, 2 }
  0x15   : > { %s121_s28 = sand.u32 1, %s1636_s11   ;;  %s1525_s3 = scalar_lea.vmem %s111_s26, 16 }
  0x16   : > { %p1744_p7 = pnand %p1455_p1, %p2565_p4  ;;  %p1751_p3 = pnand %p1468_p2, %p1710_p5 }
  0x17   : > { %s1328_s30 = sshll.u32 %s121_s28, 6  ;;  %p1526_p8 = scmp.ne.s32.totalorder %s111_s26, %s1525_s3 }
  0x18   : > { %p1527_p9 = pneg %p1744_p7  ;;  %p1533_p12 = scmp.lt.s32.totalorder %s111_s26, %s111_s26 }
  0x19   : > { %p1534_p11 = scmp.lt.s32.totalorder %s1525_s3, %s1525_s3 }
  0x1a   : > { %p1528_p10 = pnand %p1527_p9, %p1526_p8 }
  0x1b   : > { %p1535_p1 = por %p1534_p11, %p1533_p12 }
  0x1c   : > { %p1529_p0 = pneg %p1528_p10 }
  0x1e   : > { %p1536_p4 = pnand %p1535_p1, %p1529_p0 }
  0x20   : > { %1539 = shalt.err (!%p1536_p4)
}
  0x21   : > { %s1642_s4 = smov [#allocation7]   ;;  %s1445_s5 = sshll.u32 %s1640_s12, 10 }
  0x22   : > { %1458 = dma.vmem_to_smem (!%p1744_p7), %s111_s26, 16, %s1642_s4, [#allocation6]  }
  0x23   : > { %s125_s6 = scalar_lea.vmem [#allocation3], %s1328_s30  ;;  %s1763_s16 = scalar_lea.hbm %s2561_s0, %s1445_s5 }
  0x24   : > { %s132_s7 = sshll.u32 %s125_s6, 4  ;;  %s1767_s17 = scalar_lea.sflag [#allocation4], %s121_s28  ;;  %s1765_s7 = int_to_ptr.vmem [resolvable:$true] %s132_s7 }
  0x25   : > { %s1540_s19 = scalar_lea.hbm %s1763_s16, 1024  ;;  %p1542_p5 = pneg %p1751_p3 }
  0x26   : > { %p1541_p4 = scmp.ne.s32.totalorder %s1763_s16, %s1540_s19  ;;  %s1545_s26 = scalar_lea.hbm %s2561_s0, 2048 }
  0x27   : > { %p1546_p0 = scmp.lt.u32.totalorder %s1763_s16, %s2561_s0  ;;  %p1547_p2 = scmp.lt.u32.totalorder %s1545_s26, %s1540_s19 }
  0x28   : > { %p1543_p11 = pnand %p1542_p5, %p1541_p4  ;;  %p1549_p8 = scmp.lt.u32.totalorder %s1540_s19, %s1763_s16 }
  0x29   : > { %p1548_p7 = por %p1547_p2, %p1546_p0 }
  0x2a   : > { %p1544_p12 = pneg %p1543_p11 }
  0x2b   : > { %p1550_p9 = por %p1549_p8, %p1548_p7 }
  0x2d   : > { %p1551_p10 = pnand %p1550_p9, %p1544_p12 }
  0x2f   : > { %1554 = shalt.err (!%p1551_p10)
}
  0x30   : > { %s1555_s28 = scalar_lea.vmem %s1765_s7, 1024  ;;  %s1643_s3 = smov [#allocation3]  }
  0x31   : > { %p1556_p1 = scmp.ne.s32.totalorder %s1765_s7, %s1555_s28  ;;  %s1560_s4 = sshll.u32 %s1643_s3, 4  ;;  %s1561_s4 = int_to_ptr.vmem [resolvable:$false] %s1560_s4 }
  0x32   : > { %s1562_s5 = scalar_lea.vmem %s1561_s4, 2048  ;;  %p1563_p6 = scmp.lt.s32.totalorder %s1765_s7, %s1561_s4 }
  0x33   : > { %p1558_p4 = pnand %p1556_p1, %p1542_p5  ;;  %p1564_p0 = scmp.lt.s32.totalorder %s1562_s5, %s1555_s28 }
  0x35   : > { %p1559_p11 = pneg %p1558_p4  ;;  %p1565_p2 = por %p1564_p0, %p1563_p6 }
  0x37   : > { %p1566_p7 = pnand %p1565_p2, %p1559_p11 }
  0x39   : > { %1569 = shalt.err (!%p1566_p7)
}
  0x3a   : > { %s1644_s6 = smov 128   ;;  %s1645_s8 = smov 8  }
  0x3b   : > { %1462 = dma.hbm_to_vmem [thread:$0]  (!%p1751_p3), %s1763_s16, 1024, %s1765_s7, %s1767_s17, %s1644_s6, %s1644_s6, %s1645_s8  }
  0x3c   : > { %144 = sbr.rel (%p1731_p13) target bundleno = 587 (0x24b), region = 28  ;;  %s1798_s14 = sand.u32 (!%p1731_p13), 1, %s1632_s10  }
  0x3d   : > { %s1332_s19 = sshll.u32 (!%p1731_p13), %s1798_s14, 6  ;;  %s147_s24 = scalar_lea.sflag (!%p1731_p13), [#allocation4], %s1798_s14 }
  0x3e   : > { %s150_s25 = scalar_lea.vmem (!%p1731_p13), [#allocation3], %s1332_s19  ;;  %p2574_p6 = scmp.ne.s32.totalorder (!%p1731_p13), %s2568_s20, 0 }
  0x43   : > { %1615 = dma.done.wait (%p2574_p6), %s147_s24, 1024  }
  0x44   : > { %1617 = vsyncadd (%p2574_p6), %s147_s24, 4294966272  ;;  %p2575_p5 = scmp.eq.s32.totalorder %s1692_s13, 0 }
  0x46   : > { %1619 = dma.done.wait (%p2575_p5), [#allocation6], 16   ;;  %p2576_p3 = pmov %p2575_p5 }
  0x48   : > { %1621 = vsyncadd (%p2576_p3), [#allocation6], 4294967280 }
  0x49   : > { %159 = sfence }
  0x4a   : > { %v176_v0 = vld [vmem:[%s150_s25] sm:$0xff]  ;;  %v177_v1 = vld [vmem:[%s150_s25 + $0x8] sm:$0xff]  ;;  %v1335_v2 = vld [vmem:[%s150_s25 + $0x10] sm:$0xff]  ;;  %v1646_v8 = vmov 0.0   ;;  %vm207_vm0 = vcmask 130048   ;;  %v219_v23 = vlaneseq  ;;  %s1647_s20 = smov 2  }
  0x4b   : > { %v1336_v3 = vld [vmem:[%s150_s25 + $0x18] sm:$0xff]  ;;  %v181_v4 = vadd.f32 %v1335_v2, %v176_v0  ;;  %v183_v5 = vmax.f32 %v176_v0, %v1335_v2  ;;  %v1337_v6 = vld [vmem:[%s150_s25 + $0x20] sm:$0xff]  ;;  %v1338_v7 = vld [vmem:[%s150_s25 + $0x28] sm:$0xff]  ;;  %201 = vst [vmem:[#allocation2] sm:$0xff] %v1646_v8  ;;  %v218_v25 = vrot.slane %v1646_v8, 5  ;;  %s1648_s23 = smov 3  }
  0x4c   : > { %202 = vst [vmem:[#allocation2 + $0x8] sm:$0xff] %v1646_v8  ;;  %204 = vst [vmem:[#allocation2 + $0x18] sm:$0xff] %v1646_v8  ;;  %v182_v9 = vadd.f32 %v1336_v3, %v177_v1  ;;  %v184_v10 = vmax.f32 %v177_v1, %v1336_v3  ;;  %v1339_v11 = vld [vmem:[%s150_s25 + $0x30] sm:$0xff]  ;;  %v1340_v14 = vld [vmem:[%s150_s25 + $0x38] sm:$0xff]  ;;  %v1818_v24 = vshrl.u32 %v219_v23, 7  ;;  %s1649_s29 = smov 1  }
  0x4d   : > { %205 = vst [vmem:[#allocation2 + $0x20] sm:$0xff] %v1646_v8  ;;  %v188_v12 = vadd.f32 %v1337_v6, %v181_v4  ;;  %v190_v13 = vmax.f32 %v183_v5, %v1337_v6  ;;  %s1650_s7 = smov 127   ;;  %s1651_s16 = smov 126   ;;  %v292_v34 = vrot.slane %v1646_v8, 6  ;;  %v1904_v42 = vrot.slane %v1646_v8, 7 }
  0x4e   : > { %v189_v15 = vadd.f32 %v1338_v7, %v182_v9  ;;  %v191_v16 = vmax.f32 %v184_v10, %v1338_v7  ;;  %vm221_vm1 = vcmp.lt.s32.totalorder %v1818_v24, 3  ;;  %vm293_vm2 = vcmp.lt.s32.totalorder %v1818_v24, 2  ;;  %s1652_s17 = smov 125   ;;  %s1341_s26 = sld [smem:[#allocation7 + $0x1]] }
  0x4f   : > { %v195_v17 = vadd.f32 %v1339_v11, %v188_v12  ;;  %v197_v18 = vmax.f32 %v190_v13, %v1339_v11  ;;  %vm365_vm3 = vcmp.lt.s32.totalorder %v1818_v24, 1  ;;  %v1973_v48 = vrot.slane %v1646_v8, 1  ;;  %s228_s27 = sld [smem:[#allocation7]]  ;;  %s1342_s30 = sld [smem:[#allocation7 + $0x2]] }
  0x50   : > { %v196_v19 = vadd.f32 %v1340_v14, %v189_v15  ;;  %v198_v20 = vmax.f32 %v191_v16, %v1340_v14  ;;  %vm503_vm4 = vcmp.lt.s32.totalorder %v1818_v24, 7  ;;  %v2012_v53 = vrot.slane %v1646_v8, 2  ;;  %s1343_s28 = sld [smem:[#allocation7 + $0x3]]  ;;  %s2037_s3 = sld [smem:[#allocation7 + $0x4]] }
  0x51   : > { %v199_v21 = vmul.f32 0.25, %v195_v17  ;;  %211 = vst.msk [vmem:[#allocation2 + $0x18] sm:$0xff] %vm207_vm0, %v197_v18  ;;  %vm575_vm5 = vcmp.lt.s32.totalorder %v1818_v24, 6  ;;  %s2039_s4 = sld [smem:[#allocation7 + $0x5]]  ;;  %s2045_s5 = sld [smem:[#allocation7 + $0x6]]  ;;  %vm647_vm6 = vcmp.lt.s32.totalorder %v1818_v24, 5 }
  0x52   : > { %v200_v22 = vmul.f32 0.25, %v196_v19  ;;  %212 = vst.msk [vmem:[#allocation2 + $0x20] sm:$0xff] %vm207_vm0, %v198_v20  ;;  %s2047_s6 = sld [smem:[#allocation7 + $0x7]]  ;;  %s2056_s8 = sld [smem:[#allocation7 + $0x8]] }
  0x53   : > { %208 = vst.msk [vmem:[#allocation2] sm:$0xff] %vm207_vm0, %v199_v21  ;;  %s2059_s19 = sld [smem:[#allocation7 + $0xa]]  ;;  %s2071_s24 = sld [smem:[#allocation7 + $0x9]] }
  0x54   : > { %209 = vst.msk [vmem:[#allocation2 + $0x8] sm:$0xff] %vm207_vm0, %v200_v22  ;;  %v239_v61 = vstv %s1341_s26  ;;  %s1351_s25 = sld [smem:[#allocation7 + $0xb]]  ;;  %s1352_s26 = sld [smem:[#allocation7 + $0xc]] }
  0x55   : > { %v229_v62 = vstv %s228_s27  ;;  %v249_v1 = vstv %s1342_s30  ;;  %s1353_s27 = sld [smem:[#allocation7 + $0xd]]  ;;  %s2105_s30 = sld [smem:[#allocation7 + $0xe]] }
  0x56   : > { %v255_v11 = vstv %s1343_s28  ;;  %v265_v20 = vstv %s2037_s3  ;;  %s2111_s28 = sld [smem:[#allocation7 + $0xf]]  ;;  %s2115_s3 = sld [smem:[#allocation7 + $0x11]] }
  0x57   : > { %v275_v21 = vstv %s2039_s4  ;;  %s2122_s4 = sld [smem:[#allocation7 + $0x10]]  ;;  %p2577_p12 = scmp.ne.s32.totalorder %s2569_s21, 0 }
  0x58   : > { %v1888_v37 = vld [vmem:[#allocation2 + $0x18] sm:$0xff] }
  0x59   : > { %v719_v38 = vrot.slane %v1888_v37, 5  ;;  %v790_v45 = vrot.slane %v1888_v37, 6 }
  0x5a   : > { %v1821_v26 = vld [vmem:[#allocation2] sm:$0xff] }
  0x5b   : > { %v216_v27 = vrot.slane %v1821_v26, 5  ;;  %v1825_v28 = vld [vmem:[#allocation2 + $0x8] sm:$0xff]  ;;  %v290_v32 = vrot.slane %v1821_v26, 6  ;;  %v1895_v39 = vsel %vm221_vm1, %v218_v25, %v719_v38  ;;  %v362_v40 = vrot.slane %v1821_v26, 7 }
  0x5c   : > { %v217_v29 = vrot.slane %v1825_v28, 5  ;;  %v291_v33 = vrot.slane %v1825_v28, 6  ;;  %v363_v41 = vrot.slane %v1825_v28, 7  ;;  %v1941_v46 = vsel %vm293_vm2, %v292_v34, %v790_v45 }
  0x5d   : > { %v1830_v30 = vsel %vm221_vm1, %v218_v25, %v216_v27  ;;  %v1870_v36 = vsel %vm293_vm2, %v292_v34, %v290_v32  ;;  %v1918_v44 = vsel %vm365_vm3, %v1904_v42, %v362_v40  ;;  %v501_v47 = vrot.slane %v1825_v28, 1 }
  0x5e   : > { %234 = vrot.lane.b32.xlu1 %v1830_v30, %s1647_s20  ;;  %224 = vrot.lane.b32.xlu0 %v1830_v30, %s1648_s23  ;;  %v1838_v31 = vsel %vm221_vm1, %v216_v27, %v217_v29  ;;  %v1866_v35 = vsel %vm293_vm2, %v290_v32, %v291_v33  ;;  %v1913_v43 = vsel %vm365_vm3, %v362_v40, %v363_v41  ;;  %v500_v49 = vrot.slane %v1821_v26, 1 }
  0x5f   : > { %v1984_v50 = vsel %vm503_vm4, %v501_v47, %v1973_v48  ;;  %v573_v52 = vrot.slane %v1825_v28, 2  ;;  %v572_v54 = vrot.slane %v1821_v26, 2  ;;  %v257_v17 = vmul.f32 %v255_v11, %v1838_v31 }
  0x60   : > { %v1988_v51 = vsel %vm503_vm4, %v500_v49, %v501_v47  ;;  %v256_v18 = vmul.f32 %v255_v11, %v1830_v30  ;;  %v645_v32 = vrot.slane %v1825_v28, 3  ;;  %v2068_v33 = vrot.slane %v1646_v8, 3 }
  0x61   : > { %v2023_v57 = vsel %vm575_vm5, %v573_v52, %v2012_v53  ;;  %v2027_v58 = vsel %vm575_vm5, %v572_v54, %v573_v52  ;;  %v644_v34 = vrot.slane %v1821_v26, 3  ;;  %v301_v47 = vstv %s2047_s6  ;;  %s1359_s6 = sld [smem:[#allocation7 + $0x13]] }
  0x62   : > { %236 = vrot.lane.b32.xlu1 %v1838_v31, %s1647_s20  ;;  %226 = vrot.lane.b32.xlu0 %v1838_v31, %s1648_s23  ;;  %v311_v8 = vstv %s2056_s8  ;;  %s1360_s8 = sld [smem:[#allocation7 + $0x14]] }
  0x66   : > { %246 = vrot.lane.b32.xlu1 %v1838_v31, %s1649_s29  ;;  %244 = vrot.lane.b32.xlu0 %v1830_v30, %s1649_s29 }
  0x6a   : > { %262 = vrot.lane.b32.xlu1 %v1838_v31, %s1650_s7  ;;  %260 = vrot.lane.b32.xlu0 %v1830_v30, %s1650_s7 }
  0x6e   : > { %272 = vrot.lane.b32.xlu1 %v1838_v31, %s1651_s16  ;;  %270 = vrot.lane.b32.xlu0 %v1830_v30, %s1651_s16 }
  0x72   : > { %282 = vrot.lane.b32.xlu1 %v1838_v31, %s1652_s17  ;;  %280 = vrot.lane.b32.xlu0 %v1830_v30, %s1652_s17  ;;  %v285_v31 = vstv %s2045_s5  ;;  %s1358_s5 = sld [smem:[#allocation7 + $0x12]] }
  0x76   : > { %298 = vrot.lane.b32.xlu1 %v1866_v35, %s1648_s23  ;;  %296 = vrot.lane.b32.xlu0 %v1870_v36, %s1648_s23 }
  0x7a   : > { %308 = vrot.lane.b32.xlu1 %v1866_v35, %s1647_s20  ;;  %306 = vrot.lane.b32.xlu0 %v1870_v36, %s1647_s20 }
  0x7e   : > { %318 = vrot.lane.b32.xlu1 %v1866_v35, %s1649_s29  ;;  %316 = vrot.lane.b32.xlu0 %v1870_v36, %s1649_s29 }
  0x82   : > { %334 = vrot.lane.b32.xlu1 %v1866_v35, %s1650_s7  ;;  %332 = vrot.lane.b32.xlu0 %v1870_v36, %s1650_s7 }
  0x86   : > { %344 = vrot.lane.b32.xlu1 %v1866_v35, %s1651_s16  ;;  %342 = vrot.lane.b32.xlu0 %v1870_v36, %s1651_s16 }
  0x8a   : > { %354 = vrot.lane.b32.xlu1 %v1866_v35, %s1652_s17  ;;  %352 = vrot.lane.b32.xlu0 %v1870_v36, %s1652_s17 }
  0x8e   : > { %370 = vrot.lane.b32.xlu1 %v1913_v43, %s1648_s23  ;;  %368 = vrot.lane.b32.xlu0 %v1918_v44, %s1648_s23 }
  0x92   : > { %380 = vrot.lane.b32.xlu1 %v1913_v43, %s1647_s20  ;;  %378 = vrot.lane.b32.xlu0 %v1918_v44, %s1647_s20 }
  0x96   : > { %390 = vrot.lane.b32.xlu1 %v1913_v43, %s1649_s29  ;;  %388 = vrot.lane.b32.xlu0 %v1918_v44, %s1649_s29 }
  0x9a   : > { %406 = vrot.lane.b32.xlu1 %v1913_v43, %s1650_s7  ;;  %404 = vrot.lane.b32.xlu0 %v1918_v44, %s1650_s7 }
  0x9e   : > { %416 = vrot.lane.b32.xlu1 %v1913_v43, %s1651_s16  ;;  %414 = vrot.lane.b32.xlu0 %v1918_v44, %s1651_s16 }
  0xa2   : > { %426 = vrot.lane.b32.xlu1 %v1913_v43, %s1652_s17  ;;  %424 = vrot.lane.b32.xlu0 %v1918_v44, %s1652_s17 }
  0xa6   : > { %436 = vrot.lane.b32.xlu1 %v1825_v28, %s1648_s23  ;;  %434 = vrot.lane.b32.xlu0 %v1821_v26, %s1648_s23 }
  0xaa   : > { %446 = vrot.lane.b32.xlu1 %v1825_v28, %s1647_s20  ;;  %444 = vrot.lane.b32.xlu0 %v1821_v26, %s1647_s20 }
  0xae   : > { %456 = vrot.lane.b32.xlu1 %v1825_v28, %s1649_s29  ;;  %454 = vrot.lane.b32.xlu0 %v1821_v26, %s1649_s29 }
  0xb2   : > { %472 = vrot.lane.b32.xlu1 %v1825_v28, %s1650_s7  ;;  %470 = vrot.lane.b32.xlu0 %v1821_v26, %s1650_s7 }
  0xb6   : > { %482 = vrot.lane.b32.xlu1 %v1825_v28, %s1651_s16  ;;  %480 = vrot.lane.b32.xlu0 %v1821_v26, %s1651_s16 }
  0xba   : > { %492 = vrot.lane.b32.xlu1 %v1825_v28, %s1652_s17  ;;  %490 = vrot.lane.b32.xlu0 %v1821_v26, %s1652_s17 }
  0xbe   : > { %508 = vrot.lane.b32.xlu1 %v1984_v50, %s1648_s23  ;;  %506 = vrot.lane.b32.xlu0 %v1988_v51, %s1648_s23 }
  0xc2   : > { %518 = vrot.lane.b32.xlu1 %v1984_v50, %s1647_s20  ;;  %516 = vrot.lane.b32.xlu0 %v1988_v51, %s1647_s20 }
  0xc6   : > { %528 = vrot.lane.b32.xlu1 %v1984_v50, %s1649_s29  ;;  %526 = vrot.lane.b32.xlu0 %v1988_v51, %s1649_s29 }
  0xca   : > { %544 = vrot.lane.b32.xlu1 %v1984_v50, %s1650_s7  ;;  %542 = vrot.lane.b32.xlu0 %v1988_v51, %s1650_s7 }
  0xce   : > { %554 = vrot.lane.b32.xlu1 %v1984_v50, %s1651_s16  ;;  %552 = vrot.lane.b32.xlu0 %v1988_v51, %s1651_s16 }
  0xd0   : > { %v235_v55 = vpop.permute.xlu1 %234  ;;  %v225_v56 = vpop.permute.xlu0 %224 }
  0xd1   : > { %v240_v2 = vmul.f32 %v239_v61, %v235_v55  ;;  %v230_v3 = vmul.f32 %v229_v62, %v225_v56 }
  0xd2   : > { %564 = vrot.lane.b32.xlu1 %v1984_v50, %s1652_s17  ;;  %562 = vrot.lane.b32.xlu0 %v1988_v51, %s1652_s17 }
  0xd3   : > { %v242_v12 = vadd.f32 %v240_v2, %v230_v3 }
  0xd4   : > { %v237_v59 = vpop.permute.xlu1 %236  ;;  %v227_v60 = vpop.permute.xlu0 %226 }
  0xd5   : > { %v241_v4 = vmul.f32 %v239_v61, %v237_v59  ;;  %v231_v5 = vmul.f32 %v229_v62, %v227_v60  ;;  %v2083_v60 = vsel %vm647_vm6, %v645_v32, %v2068_v33  ;;  %v2087_v61 = vsel %vm647_vm6, %v644_v34, %v645_v32 }
  0xd6   : > { %580 = vrot.lane.b32.xlu1 %v2023_v57, %s1648_s23  ;;  %578 = vrot.lane.b32.xlu0 %v2027_v58, %s1648_s23  ;;  %v347_v32 = vstv %s1352_s26  ;;  %s2182_s26 = sld [smem:[#allocation7 + $0x18]] }
  0xd7   : > { %v243_v13 = vadd.f32 %v241_v4, %v231_v5  ;;  %v327_v4 = vstv %s2059_s19  ;;  %s2160_s19 = sld [smem:[#allocation7 + $0x15]] }
  0xd8   : > { %v247_v63 = vpop.permute.xlu1 %246  ;;  %v245_v0 = vpop.permute.xlu0 %244 }
  0xd9   : > { %v251_v9 = vmul.f32 %v249_v1, %v247_v63  ;;  %v250_v10 = vmul.f32 %v249_v1, %v245_v0 }
  0xda   : > { %590 = vrot.lane.b32.xlu1 %v2023_v57, %s1647_s20  ;;  %588 = vrot.lane.b32.xlu0 %v2027_v58, %s1647_s20 }
  0xdb   : > { %v253_v16 = vadd.f32 %v251_v9, %v243_v13  ;;  %v252_v19 = vadd.f32 %v250_v10, %v242_v12  ;;  %v321_v10 = vstv %s2071_s24  ;;  %v329_v13 = vmul.f32 %v327_v4, %v1866_v35  ;;  %s2163_s24 = sld [smem:[#allocation7 + $0x16]] }
  0xdc   : > { %v263_v6 = vpop.permute.xlu1 %262  ;;  %v261_v7 = vpop.permute.xlu0 %260 }
  0xdd   : > { %v259_v25 = vadd.f32 %v257_v17, %v253_v16  ;;  %v258_v27 = vadd.f32 %v256_v18, %v252_v19  ;;  %v267_v29 = vmul.f32 %v265_v20, %v263_v6  ;;  %v266_v30 = vmul.f32 %v265_v20, %v261_v7 }
  0xde   : > { %600 = vrot.lane.b32.xlu1 %v2023_v57, %s1649_s29  ;;  %598 = vrot.lane.b32.xlu0 %v2027_v58, %s1649_s29 }
  0xdf   : > { %v269_v54 = vadd.f32 %v267_v29, %v259_v25  ;;  %v268_v55 = vadd.f32 %v266_v30, %v258_v27  ;;  %v337_v30 = vstv %s1351_s25  ;;  %s2169_s25 = sld [smem:[#allocation7 + $0x17]] }
  0xe0   : > { %v273_v14 = vpop.permute.xlu1 %272  ;;  %v271_v15 = vpop.permute.xlu0 %270 }
  0xe1   : > { %v277_v40 = vmul.f32 %v275_v21, %v273_v14  ;;  %v276_v41 = vmul.f32 %v275_v21, %v271_v15  ;;  %v328_v15 = vmul.f32 %v327_v4, %v1870_v36 }
  0xe2   : > { %616 = vrot.lane.b32.xlu1 %v2023_v57, %s1650_s7  ;;  %614 = vrot.lane.b32.xlu0 %v2027_v58, %s1650_s7 }
  0xe3   : > { %v279_v62 = vadd.f32 %v277_v40, %v269_v54  ;;  %v278_v63 = vadd.f32 %v276_v41, %v268_v55 }
  0xe4   : > { %v283_v22 = vpop.permute.xlu1 %282  ;;  %v281_v23 = vpop.permute.xlu0 %280 }
  0xe5   : > { %v287_v56 = vmul.f32 %v285_v31, %v283_v22  ;;  %v286_v59 = vmul.f32 %v285_v31, %v281_v23  ;;  %v2113_v31 = vld [vmem:[#allocation2 + $0x20] sm:$0xff] }
  0xe6   : > { %626 = vrot.lane.b32.xlu1 %v2023_v57, %s1651_s16  ;;  %624 = vrot.lane.b32.xlu0 %v2027_v58, %s1651_s16 }
  0xe7   : > { %v289_v5 = vadd.f32 %v287_v56, %v279_v62  ;;  %v288_v6 = vadd.f32 %v286_v59, %v278_v63  ;;  %v373_v56 = vstv %s2105_s30  ;;  %s2192_s30 = sld [smem:[#allocation7 + $0x1a]] }
  0xe8   : > { %v299_v49 = vpop.permute.xlu1 %298  ;;  %v297_v52 = vpop.permute.xlu0 %296 }
  0xe9   : > { %v303_v0 = vmul.f32 %v301_v47, %v299_v49  ;;  %v302_v1 = vmul.f32 %v301_v47, %v297_v52  ;;  %v357_v49 = vstv %s1353_s27  ;;  %v720_v52 = vrot.slane %v2113_v31, 5  ;;  %s2190_s27 = sld [smem:[#allocation7 + $0x19]] }
  0xea   : > { %636 = vrot.lane.b32.xlu1 %v2023_v57, %s1652_s17  ;;  %634 = vrot.lane.b32.xlu0 %v2027_v58, %s1652_s17 }
  0xeb   : > { %v305_v11 = vadd.f32 %v303_v0, %v289_v5  ;;  %v304_v12 = vadd.f32 %v302_v1, %v288_v6 }
  0xec   : > { %v309_v2 = vpop.permute.xlu1 %308  ;;  %v307_v3 = vpop.permute.xlu0 %306 }
  0xed   : > { %v313_v7 = vmul.f32 %v311_v8, %v309_v2  ;;  %v312_v9 = vmul.f32 %v311_v8, %v307_v3  ;;  %v383_v2 = vstv %s2111_s28  ;;  %v2134_v3 = vsel %vm221_vm1, %v719_v38, %v720_v52  ;;  %s2199_s28 = sld [smem:[#allocation7 + $0x1b]] }
  0xee   : > { %652 = vrot.lane.b32.xlu1 %v2083_v60, %s1648_s23  ;;  %650 = vrot.lane.b32.xlu0 %v2087_v61, %s1648_s23 }
  0xef   : > { %v315_v17 = vadd.f32 %v313_v7, %v305_v11  ;;  %v314_v18 = vadd.f32 %v312_v9, %v304_v12  ;;  %v399_v11 = vstv %s2115_s3  ;;  %s2201_s3 = sld [smem:[#allocation7 + $0x1c]] }
  0xf0   : > { %v319_v14 = vpop.permute.xlu1 %318  ;;  %v317_v16 = vpop.permute.xlu0 %316 }
  0xf1   : > { %v323_v19 = vmul.f32 %v321_v10, %v319_v14  ;;  %v322_v20 = vmul.f32 %v321_v10, %v317_v16  ;;  %v393_v16 = vstv %s2122_s4  ;;  %s2210_s4 = sld [smem:[#allocation7 + $0x1d]] }
  0xf2   : > { %662 = vrot.lane.b32.xlu1 %v2083_v60, %s1647_s20  ;;  %660 = vrot.lane.b32.xlu0 %v2087_v61, %s1647_s20 }
  0xf3   : > { %v325_v21 = vadd.f32 %v323_v19, %v315_v17  ;;  %v324_v22 = vadd.f32 %v322_v20, %v314_v18  ;;  %v401_v18 = vmul.f32 %v399_v11, %v1913_v43  ;;  %v400_v20 = vmul.f32 %v399_v11, %v1918_v44 }
  0xf4   : > { %v335_v23 = vpop.permute.xlu1 %334  ;;  %v333_v25 = vpop.permute.xlu0 %332 }
  0xf5   : > { %v331_v35 = vadd.f32 %v329_v13, %v325_v21  ;;  %v330_v27 = vadd.f32 %v328_v15, %v324_v22  ;;  %v339_v41 = vmul.f32 %v337_v30, %v335_v23  ;;  %v338_v47 = vmul.f32 %v337_v30, %v333_v25 }
  0xf6   : > { %672 = vrot.lane.b32.xlu1 %v2083_v60, %s1649_s29  ;;  %670 = vrot.lane.b32.xlu0 %v2087_v61, %s1649_s29 }
  0xf7   : > { %v341_v62 = vadd.f32 %v339_v41, %v331_v35  ;;  %v340_v63 = vadd.f32 %v338_v47, %v330_v27  ;;  %v791_v47 = vrot.slane %v2113_v31, 6 }
  0xf8   : > { %v345_v36 = vpop.permute.xlu1 %344  ;;  %v343_v29 = vpop.permute.xlu0 %342 }
  0xf9   : > { %v349_v54 = vmul.f32 %v347_v32, %v345_v36  ;;  %v348_v55 = vmul.f32 %v347_v32, %v343_v29 }
  0xfa   : > { %688 = vrot.lane.b32.xlu1 %v2083_v60, %s1650_s7  ;;  %686 = vrot.lane.b32.xlu0 %v2087_v61, %s1650_s7 }
  0xfb   : > { %v351_v4 = vadd.f32 %v349_v54, %v341_v62  ;;  %v350_v5 = vadd.f32 %v348_v55, %v340_v63  ;;  %v419_v55 = vstv %s1359_s6  ;;  %v429_v62 = vstv %s1360_s8  ;;  %s2222_s6 = sld [smem:[#allocation7 + $0x1e]]  ;;  %s1372_s8 = sld [smem:[#allocation7 + $0x20]] }
  0xfc   : > { %v355_v34 = vpop.permute.xlu1 %354  ;;  %v353_v40 = vpop.permute.xlu0 %352 }
  0xfd   : > { %v359_v0 = vmul.f32 %v357_v49, %v355_v34  ;;  %v358_v1 = vmul.f32 %v357_v49, %v353_v40  ;;  %v409_v49 = vstv %s1358_s5  ;;  %s2213_s5 = sld [smem:[#allocation7 + $0x1f]] }
  0xfe   : > { %698 = vrot.lane.b32.xlu1 %v2083_v60, %s1651_s16  ;;  %696 = vrot.lane.b32.xlu0 %v2087_v61, %s1651_s16 }
  0xff   : > { %v361_v12 = vadd.f32 %v359_v0, %v351_v4  ;;  %v360_v13 = vadd.f32 %v358_v1, %v350_v5  ;;  %v439_v4 = vstv %s2160_s19  ;;  %s1373_s19 = sld [smem:[#allocation7 + $0x21]] }
 0x100   : > { %v371_v59 = vpop.permute.xlu1 %370  ;;  %v369_v8 = vpop.permute.xlu0 %368 }
 0x101   : > { %v375_v6 = vmul.f32 %v373_v56, %v371_v59  ;;  %v374_v7 = vmul.f32 %v373_v56, %v369_v8  ;;  %v2175_v8 = vsel %vm293_vm2, %v790_v45, %v791_v47  ;;  %v485_v47 = vstv %s2192_s30  ;;  %s2267_s30 = sld [smem:[#allocation7 + $0x25]] }
 0x102   : > { %708 = vrot.lane.b32.xlu1 %v2083_v60, %s1652_s17  ;;  %706 = vrot.lane.b32.xlu0 %v2087_v61, %s1652_s17 }
 0x103   : > { %v377_v38 = vadd.f32 %v375_v6, %v361_v12  ;;  %v376_v17 = vadd.f32 %v374_v7, %v360_v13 }
 0x104   : > { %v381_v9 = vpop.permute.xlu1 %380  ;;  %v379_v10 = vpop.permute.xlu0 %378 }
 0x105   : > { %v385_v14 = vmul.f32 %v383_v2, %v381_v9  ;;  %v384_v15 = vmul.f32 %v383_v2, %v379_v10  ;;  %v449_v9 = vstv %s2163_s24  ;;  %s1374_s24 = sld [smem:[#allocation7 + $0x22]] }
 0x106   : > { %726 = vrot.lane.b32.xlu1 %v2134_v3, %s1648_s23  ;;  %724 = vrot.lane.b32.xlu0 %v1895_v39, %s1648_s23 }
 0x107   : > { %v387_v22 = vadd.f32 %v385_v14, %v377_v38  ;;  %v386_v23 = vadd.f32 %v384_v15, %v376_v17 }
 0x108   : > { %v391_v19 = vpop.permute.xlu1 %390  ;;  %v389_v21 = vpop.permute.xlu0 %388 }
 0x109   : > { %v395_v25 = vmul.f32 %v393_v16, %v391_v19  ;;  %v394_v35 = vmul.f32 %v393_v16, %v389_v21  ;;  %v459_v16 = vstv %s2169_s25  ;;  %s1375_s25 = sld [smem:[#allocation7 + $0x23]] }
 0x10a   : > { %736 = vrot.lane.b32.xlu1 %v2134_v3, %s1647_s20  ;;  %734 = vrot.lane.b32.xlu0 %v1895_v39, %s1647_s20 }
 0x10b   : > { %v397_v27 = vadd.f32 %v395_v25, %v387_v22  ;;  %v396_v36 = vadd.f32 %v394_v35, %v386_v23 }
 0x10c   : > { %v407_v29 = vpop.permute.xlu1 %406  ;;  %v405_v30 = vpop.permute.xlu0 %404 }
 0x10d   : > { %v403_v32 = vadd.f32 %v401_v18, %v397_v27  ;;  %v402_v43 = vadd.f32 %v400_v20, %v396_v36  ;;  %v411_v56 = vmul.f32 %v409_v49, %v407_v29  ;;  %v410_v59 = vmul.f32 %v409_v49, %v405_v30 }
 0x10e   : > { %746 = vrot.lane.b32.xlu1 %v2134_v3, %s1649_s29  ;;  %744 = vrot.lane.b32.xlu0 %v1895_v39, %s1649_s29  ;;  %v465_v27 = vstv %s2182_s26  ;;  %s2259_s26 = sld [smem:[#allocation7 + $0x24]] }
 0x10f   : > { %v413_v5 = vadd.f32 %v411_v56, %v403_v32  ;;  %v412_v6 = vadd.f32 %v410_v59, %v402_v43  ;;  %v467_v43 = vmul.f32 %v465_v27, %v1825_v28  ;;  %v495_v56 = vstv %s2199_s28  ;;  %s2275_s28 = sld [smem:[#allocation7 + $0x27]] }
 0x110   : > { %v417_v44 = vpop.permute.xlu1 %416  ;;  %v415_v34 = vpop.permute.xlu0 %414  ;;  %v861_v59 = vrot.slane %v1888_v37, 7 }
 0x111   : > { %v421_v1 = vmul.f32 %v419_v55, %v417_v44  ;;  %v420_v2 = vmul.f32 %v419_v55, %v415_v34  ;;  %v466_v34 = vmul.f32 %v465_v27, %v1821_v26 }
 0x112   : > { %762 = vrot.lane.b32.xlu1 %v2134_v3, %s1650_s7  ;;  %760 = vrot.lane.b32.xlu0 %v1895_v39, %s1650_s7 }
 0x113   : > { %v423_v12 = vadd.f32 %v421_v1, %v413_v5  ;;  %v422_v13 = vadd.f32 %v420_v2, %v412_v6  ;;  %v511_v1 = vstv %s2201_s3  ;;  %s1380_s3 = sld [smem:[#allocation7 + $0x28]] }
 0x114   : > { %v427_v40 = vpop.permute.xlu1 %426  ;;  %v425_v41 = vpop.permute.xlu0 %424 }
 0x115   : > { %v431_v7 = vmul.f32 %v429_v62, %v427_v40  ;;  %v430_v45 = vmul.f32 %v429_v62, %v425_v41  ;;  %v475_v41 = vstv %s2190_s27  ;;  %v862_v62 = vrot.slane %v2113_v31, 7  ;;  %s2261_s27 = sld [smem:[#allocation7 + $0x26]] }
 0x116   : > { %772 = vrot.lane.b32.xlu1 %v2134_v3, %s1651_s16  ;;  %770 = vrot.lane.b32.xlu0 %v1895_v39, %s1651_s16 }
 0x117   : > { %v433_v38 = vadd.f32 %v431_v7, %v423_v12  ;;  %v432_v17 = vadd.f32 %v430_v45, %v422_v13 }
 0x118   : > { %v437_v52 = vpop.permute.xlu1 %436  ;;  %v435_v54 = vpop.permute.xlu0 %434 }
 0x119   : > { %v441_v14 = vmul.f32 %v439_v4, %v437_v52  ;;  %v440_v15 = vmul.f32 %v439_v4, %v435_v54 }
 0x11a   : > { %782 = vrot.lane.b32.xlu1 %v2134_v3, %s1652_s17  ;;  %780 = vrot.lane.b32.xlu0 %v1895_v39, %s1652_s17 }
 0x11b   : > { %v443_v22 = vadd.f32 %v441_v14, %v433_v38  ;;  %v442_v23 = vadd.f32 %v440_v15, %v432_v17  ;;  %v537_v17 = vstv %s2213_s5  ;;  %s2293_s5 = sld [smem:[#allocation7 + $0x2a]] }
 0x11c   : > { %v447_v63 = vpop.permute.xlu1 %446  ;;  %v445_v0 = vpop.permute.xlu0 %444  ;;  %v538_v27 = vmul.f32 %v537_v17, %v1988_v51 }
 0x11d   : > { %v451_v18 = vmul.f32 %v449_v9, %v447_v63  ;;  %v450_v19 = vmul.f32 %v449_v9, %v445_v0  ;;  %v521_v9 = vstv %s2210_s4  ;;  %s1381_s4 = sld [smem:[#allocation7 + $0x29]] }
 0x11e   : > { %797 = vrot.lane.b32.xlu1 %v2175_v8, %s1648_s23  ;;  %795 = vrot.lane.b32.xlu0 %v1941_v46, %s1648_s23 }
 0x11f   : > { %v453_v36 = vadd.f32 %v451_v18, %v443_v22  ;;  %v452_v29 = vadd.f32 %v450_v19, %v442_v23  ;;  %v531_v22 = vstv %s2222_s6  ;;  %s2299_s6 = sld [smem:[#allocation7 + $0x2b]] }
 0x120   : > { %v457_v10 = vpop.permute.xlu1 %456  ;;  %v455_v11 = vpop.permute.xlu0 %454 }
 0x121   : > { %v461_v25 = vmul.f32 %v459_v16, %v457_v10  ;;  %v460_v35 = vmul.f32 %v459_v16, %v455_v11  ;;  %v2232_v10 = vsel %vm365_vm3, %v861_v59, %v862_v62  ;;  %v2237_v11 = vsel %vm365_vm3, %v1904_v42, %v861_v59 }
 0x122   : > { %807 = vrot.lane.b32.xlu1 %v2175_v8, %s1647_s20  ;;  %805 = vrot.lane.b32.xlu0 %v1941_v46, %s1647_s20  ;;  %v567_v59 = vstv %s1374_s24  ;;  %s2317_s24 = sld [smem:[#allocation7 + $0x2e]] }
 0x123   : > { %v463_v44 = vadd.f32 %v461_v25, %v453_v36  ;;  %v462_v40 = vadd.f32 %v460_v35, %v452_v29  ;;  %v539_v25 = vmul.f32 %v537_v17, %v1984_v50 }
 0x124   : > { %v473_v20 = vpop.permute.xlu1 %472  ;;  %v471_v21 = vpop.permute.xlu0 %470 }
 0x125   : > { %v469_v28 = vadd.f32 %v467_v43, %v463_v44  ;;  %v468_v54 = vadd.f32 %v466_v34, %v462_v40  ;;  %v477_v55 = vmul.f32 %v475_v41, %v473_v20  ;;  %v476_v26 = vmul.f32 %v475_v41, %v471_v21 }
 0x126   : > { %817 = vrot.lane.b32.xlu1 %v2175_v8, %s1649_s29  ;;  %815 = vrot.lane.b32.xlu0 %v1941_v46, %s1649_s29 }
 0x127   : > { %v479_v5 = vadd.f32 %v477_v55, %v469_v28  ;;  %v478_v6 = vadd.f32 %v476_v26, %v468_v54  ;;  %v557_v28 = vstv %s1373_s19  ;;  %s2308_s19 = sld [smem:[#allocation7 + $0x2d]] }
 0x128   : > { %v483_v30 = vpop.permute.xlu1 %482  ;;  %v481_v32 = vpop.permute.xlu0 %480 }
 0x129   : > { %v487_v63 = vmul.f32 %v485_v47, %v483_v30  ;;  %v486_v0 = vmul.f32 %v485_v47, %v481_v32 }
 0x12a   : > { %833 = vrot.lane.b32.xlu1 %v2175_v8, %s1650_s7  ;;  %831 = vrot.lane.b32.xlu0 %v1941_v46, %s1650_s7 }
 0x12b   : > { %v489_v12 = vadd.f32 %v487_v63, %v479_v5  ;;  %v488_v13 = vadd.f32 %v486_v0, %v478_v6  ;;  %v583_v0 = vstv %s1375_s25  ;;  %s1387_s25 = sld [smem:[#allocation7 + $0x2f]] }
 0x12c   : > { %v493_v49 = vpop.permute.xlu1 %492  ;;  %v491_v52 = vpop.permute.xlu0 %490 }
 0x12d   : > { %v497_v7 = vmul.f32 %v495_v56, %v493_v49  ;;  %v496_v45 = vmul.f32 %v495_v56, %v491_v52  ;;  %v547_v52 = vstv %s1372_s8  ;;  %s2306_s8 = sld [smem:[#allocation7 + $0x2c]] }
 0x12e   : > { %843 = vrot.lane.b32.xlu1 %v2175_v8, %s1651_s16  ;;  %841 = vrot.lane.b32.xlu0 %v1941_v46, %s1651_s16 }
 0x12f   : > { %v499_v18 = vadd.f32 %v497_v7, %v489_v12  ;;  %v498_v19 = vadd.f32 %v496_v45, %v488_v13  ;;  %v593_v45 = vstv %s2259_s26  ;;  %s1388_s26 = sld [smem:[#allocation7 + $0x30]] }
 0x130   : > { %v509_v2 = vpop.permute.xlu1 %508  ;;  %v507_v4 = vpop.permute.xlu0 %506 }
 0x131   : > { %v513_v14 = vmul.f32 %v511_v1, %v509_v2  ;;  %v512_v15 = vmul.f32 %v511_v1, %v507_v4 }
 0x132   : > { %853 = vrot.lane.b32.xlu1 %v2175_v8, %s1652_s17  ;;  %851 = vrot.lane.b32.xlu0 %v1941_v46, %s1652_s17 }
 0x133   : > { %v515_v42 = vadd.f32 %v513_v14, %v499_v18  ;;  %v514_v23 = vadd.f32 %v512_v15, %v498_v19 }
 0x134   : > { %v519_v16 = vpop.permute.xlu1 %518  ;;  %v517_v38 = vpop.permute.xlu0 %516 }
 0x135   : > { %v523_v20 = vmul.f32 %v521_v9, %v519_v16  ;;  %v522_v21 = vmul.f32 %v521_v9, %v517_v38  ;;  %v609_v38 = vstv %s2261_s27  ;;  %s1389_s27 = sld [smem:[#allocation7 + $0x31]] }
 0x136   : > { %868 = vrot.lane.b32.xlu1 %v2232_v10, %s1648_s23  ;;  %866 = vrot.lane.b32.xlu0 %v2237_v11, %s1648_s23 }
 0x137   : > { %v525_v29 = vadd.f32 %v523_v20, %v515_v42  ;;  %v524_v30 = vadd.f32 %v522_v21, %v514_v23  ;;  %v603_v21 = vstv %s2267_s30  ;;  %v611_v23 = vmul.f32 %v609_v38, %v2023_v57  ;;  %s2349_s30 = sld [smem:[#allocation7 + $0x32]] }
 0x138   : > { %v529_v35 = vpop.permute.xlu1 %528  ;;  %v527_v36 = vpop.permute.xlu0 %526 }
 0x139   : > { %v533_v32 = vmul.f32 %v531_v22, %v529_v35  ;;  %v532_v43 = vmul.f32 %v531_v22, %v527_v36  ;;  %v610_v35 = vmul.f32 %v609_v38, %v2027_v58  ;;  %v629_v58 = vstv %s1380_s3  ;;  %s2357_s3 = sld [smem:[#allocation7 + $0x34]] }
 0x13a   : > { %878 = vrot.lane.b32.xlu1 %v2232_v10, %s1647_s20  ;;  %876 = vrot.lane.b32.xlu0 %v2237_v11, %s1647_s20 }
 0x13b   : > { %v535_v44 = vadd.f32 %v533_v32, %v525_v29  ;;  %v534_v34 = vadd.f32 %v532_v43, %v524_v30 }
 0x13c   : > { %v545_v40 = vpop.permute.xlu1 %544  ;;  %v543_v41 = vpop.permute.xlu0 %542 }
 0x13d   : > { %v541_v50 = vadd.f32 %v539_v25, %v535_v44  ;;  %v540_v47 = vadd.f32 %v538_v27, %v534_v34  ;;  %v549_v26 = vmul.f32 %v547_v52, %v545_v40  ;;  %v548_v56 = vmul.f32 %v547_v52, %v543_v41 }
 0x13e   : > { %888 = vrot.lane.b32.xlu1 %v2232_v10, %s1649_s29  ;;  %886 = vrot.lane.b32.xlu0 %v2237_v11, %s1649_s29  ;;  %v619_v34 = vstv %s2275_s28  ;;  %s2355_s28 = sld [smem:[#allocation7 + $0x33]] }
 0x13f   : > { %v551_v4 = vadd.f32 %v549_v26, %v541_v50  ;;  %v550_v5 = vadd.f32 %v548_v56, %v540_v47 }
 0x140   : > { %v555_v51 = vpop.permute.xlu1 %554  ;;  %v553_v49 = vpop.permute.xlu0 %552 }
 0x141   : > { %v559_v62 = vmul.f32 %v557_v28, %v555_v51  ;;  %v558_v63 = vmul.f32 %v557_v28, %v553_v49 }
 0x142   : > { %904 = vrot.lane.b32.xlu1 %v2232_v10, %s1650_s7  ;;  %902 = vrot.lane.b32.xlu0 %v2237_v11, %s1650_s7 }
 0x143   : > { %v561_v9 = vadd.f32 %v559_v62, %v551_v4  ;;  %v560_v12 = vadd.f32 %v558_v63, %v550_v5  ;;  %v655_v4 = vstv %s2293_s5  ;;  %s1394_s5 = sld [smem:[#allocation7 + $0x36]] }
 0x144   : > { %v565_v54 = vpop.permute.xlu1 %564  ;;  %v563_v55 = vpop.permute.xlu0 %562 }
 0x145   : > { %v569_v6 = vmul.f32 %v567_v59, %v565_v54  ;;  %v568_v7 = vmul.f32 %v567_v59, %v563_v55  ;;  %v639_v55 = vstv %s1381_s4  ;;  %s2368_s4 = sld [smem:[#allocation7 + $0x35]] }
 0x146   : > { %914 = vrot.lane.b32.xlu1 %v2232_v10, %s1651_s16  ;;  %912 = vrot.lane.b32.xlu0 %v2237_v11, %s1651_s16 }
 0x147   : > { %v571_v17 = vadd.f32 %v569_v6, %v561_v9  ;;  %v570_v18 = vadd.f32 %v568_v7, %v560_v12  ;;  %v999_v7 = vrot.slane %v2113_v31, 1 }
 0x148   : > { %v581_v1 = vpop.permute.xlu1 %580  ;;  %v579_v2 = vpop.permute.xlu0 %578 }
 0x149   : > { %v585_v13 = vmul.f32 %v583_v0, %v581_v1  ;;  %v584_v14 = vmul.f32 %v583_v0, %v579_v2 }
 0x14a   : > { %924 = vrot.lane.b32.xlu1 %v2232_v10, %s1652_s17  ;;  %922 = vrot.lane.b32.xlu0 %v2237_v11, %s1652_s17 }
 0x14b   : > { %v587_v22 = vadd.f32 %v585_v13, %v571_v17  ;;  %v586_v42 = vadd.f32 %v584_v14, %v570_v18  ;;  %v2322_v17 = vsel %vm503_vm4, %v999_v7, %v1973_v48 }
 0x14c   : > { %v591_v15 = vpop.permute.xlu1 %590  ;;  %v589_v16 = vpop.permute.xlu0 %588 }
 0x14d   : > { %v595_v19 = vmul.f32 %v593_v45, %v591_v15  ;;  %v594_v20 = vmul.f32 %v593_v45, %v589_v16  ;;  %v998_v45 = vrot.slane %v1888_v37, 1  ;;  %v665_v15 = vstv %s2299_s6  ;;  %s1395_s6 = sld [smem:[#allocation7 + $0x37]] }
 0x14e   : > { %934 = vrot.lane.b32.xlu1 %v2113_v31, %s1648_s23  ;;  %932 = vrot.lane.b32.xlu0 %v1888_v37, %s1648_s23 }
 0x14f   : > { %v597_v36 = vadd.f32 %v595_v19, %v587_v22  ;;  %v596_v29 = vadd.f32 %v594_v20, %v586_v42  ;;  %v2326_v18 = vsel %vm503_vm4, %v998_v45, %v999_v7  ;;  %v681_v42 = vstv %s2308_s19  ;;  %s2400_s19 = sld [smem:[#allocation7 + $0x39]] }
 0x150   : > { %v601_v25 = vpop.permute.xlu1 %600  ;;  %v599_v27 = vpop.permute.xlu0 %598 }
 0x151   : > { %v605_v30 = vmul.f32 %v603_v21, %v601_v25  ;;  %v604_v32 = vmul.f32 %v603_v21, %v599_v27  ;;  %v683_v27 = vmul.f32 %v681_v42, %v2083_v60 }
 0x152   : > { %944 = vrot.lane.b32.xlu1 %v2113_v31, %s1647_s20  ;;  %942 = vrot.lane.b32.xlu0 %v1888_v37, %s1647_s20 }
 0x153   : > { %v607_v43 = vadd.f32 %v605_v30, %v597_v36  ;;  %v606_v44 = vadd.f32 %v604_v32, %v596_v29  ;;  %v682_v29 = vmul.f32 %v681_v42, %v2087_v61  ;;  %v691_v32 = vstv %s2317_s24  ;;  %s2402_s24 = sld [smem:[#allocation7 + $0x3b]] }
 0x154   : > { %v617_v40 = vpop.permute.xlu1 %616  ;;  %v615_v57 = vpop.permute.xlu0 %614  ;;  %v701_v61 = vstv %s1387_s25  ;;  %v755_v42 = vstv %s2357_s3  ;;  %s2410_s25 = sld [smem:[#allocation7 + $0x3a]]  ;;  %s1410_s3 = sld [smem:[#allocation7 + $0x46]] }
 0x155   : > { %v613_v41 = vadd.f32 %v611_v23, %v607_v43  ;;  %v612_v50 = vadd.f32 %v610_v35, %v606_v44  ;;  %v621_v47 = vmul.f32 %v619_v34, %v617_v40  ;;  %v620_v51 = vmul.f32 %v619_v34, %v615_v57 }
 0x156   : > { %954 = vrot.lane.b32.xlu1 %v2113_v31, %s1649_s29  ;;  %952 = vrot.lane.b32.xlu0 %v1888_v37, %s1649_s29 }
 0x157   : > { %v623_v26 = vadd.f32 %v621_v47, %v613_v41  ;;  %v622_v56 = vadd.f32 %v620_v51, %v612_v50 }
 0x158   : > { %v627_v49 = vpop.permute.xlu1 %626  ;;  %v625_v52 = vpop.permute.xlu0 %624 }
 0x159   : > { %v631_v28 = vmul.f32 %v629_v58, %v627_v49  ;;  %v630_v54 = vmul.f32 %v629_v58, %v625_v52 }
 0x15a   : > { %970 = vrot.lane.b32.xlu1 %v2113_v31, %s1650_s7  ;;  %968 = vrot.lane.b32.xlu0 %v1888_v37, %s1650_s7  ;;  %v820_v24 = vstv %s2410_s25  ;;  %s2475_s25 = sld [smem:[#allocation7 + $0x4d]] }
 0x15b   : > { %v633_v63 = vadd.f32 %v631_v28, %v623_v26  ;;  %v632_v0 = vadd.f32 %v630_v54, %v622_v56  ;;  %v711_v54 = vstv %s1388_s26  ;;  %s1401_s26 = sld [smem:[#allocation7 + $0x3d]] }
 0x15c   : > { %v637_v59 = vpop.permute.xlu1 %636  ;;  %v635_v62 = vpop.permute.xlu0 %634 }
 0x15d   : > { %v641_v1 = vmul.f32 %v639_v55, %v637_v59  ;;  %v640_v2 = vmul.f32 %v639_v55, %v635_v62 }
 0x15e   : > { %980 = vrot.lane.b32.xlu1 %v2113_v31, %s1651_s16  ;;  %978 = vrot.lane.b32.xlu0 %v1888_v37, %s1651_s16 }
 0x15f   : > { %v643_v5 = vadd.f32 %v641_v1, %v633_v63  ;;  %v642_v6 = vadd.f32 %v640_v2, %v632_v0  ;;  %v729_v0 = vstv %s1389_s27  ;;  %s1402_s27 = sld [smem:[#allocation7 + $0x3e]] }
 0x160   : > { %v653_v9 = vpop.permute.xlu1 %652  ;;  %v651_v12 = vpop.permute.xlu0 %650 }
 0x161   : > { %v657_v13 = vmul.f32 %v655_v4, %v653_v9  ;;  %v656_v14 = vmul.f32 %v655_v4, %v651_v12  ;;  %v1070_v4 = vrot.slane %v2113_v31, 2 }
 0x162   : > { %990 = vrot.lane.b32.xlu1 %v2113_v31, %s1652_s17  ;;  %988 = vrot.lane.b32.xlu0 %v1888_v37, %s1652_s17  ;;  %v675_v37 = vstv %s2306_s8  ;;  %s1396_s8 = sld [smem:[#allocation7 + $0x38]] }
 0x163   : > { %v659_v16 = vadd.f32 %v657_v13, %v643_v5  ;;  %v658_v38 = vadd.f32 %v656_v14, %v642_v6  ;;  %v2360_v5 = vld [vmem:[#allocation2 + $0x18] sm:$0xff]  ;;  %v739_v13 = vstv %s2349_s30  ;;  %s1403_s30 = sld [smem:[#allocation7 + $0x3f]] }
 0x164   : > { %v663_v19 = vpop.permute.xlu1 %662  ;;  %v661_v20 = vpop.permute.xlu0 %660  ;;  %v1069_v6 = vrot.slane %v2360_v5, 2 }
 0x165   : > { %v667_v21 = vmul.f32 %v665_v15, %v663_v19  ;;  %v666_v22 = vmul.f32 %v665_v15, %v661_v20 }
 0x166   : > { %1005 = vrot.lane.b32.xlu1 %v2322_v17, %s1648_s23  ;;  %1003 = vrot.lane.b32.xlu0 %v2326_v18, %s1648_s23 }
 0x167   : > { %v669_v48 = vadd.f32 %v667_v21, %v659_v16  ;;  %v668_v23 = vadd.f32 %v666_v22, %v658_v38  ;;  %v2373_v16 = vsel %vm575_vm5, %v1070_v4, %v2012_v53  ;;  %v2377_v38 = vsel %vm575_vm5, %v1069_v6, %v1070_v4 }
 0x168   : > { %v673_v25 = vpop.permute.xlu1 %672  ;;  %v671_v35 = vpop.permute.xlu0 %670 }
 0x169   : > { %v677_v36 = vmul.f32 %v675_v37, %v673_v25  ;;  %v676_v30 = vmul.f32 %v675_v37, %v671_v35  ;;  %v749_v37 = vstv %s2355_s28  ;;  %v757_v35 = vmul.f32 %v755_v42, %v2134_v3  ;;  %s2448_s28 = sld [smem:[#allocation7 + $0x42]] }
 0x16a   : > { %1015 = vrot.lane.b32.xlu1 %v2322_v17, %s1647_s20  ;;  %1013 = vrot.lane.b32.xlu0 %v2326_v18, %s1647_s20 }
 0x16b   : > { %v679_v43 = vadd.f32 %v677_v36, %v669_v48  ;;  %v678_v44 = vadd.f32 %v676_v30, %v668_v23  ;;  %v756_v36 = vmul.f32 %v755_v42, %v1895_v39  ;;  %v765_v30 = vstv %s2368_s4  ;;  %s1411_s4 = sld [smem:[#allocation7 + $0x47]] }
 0x16c   : > { %v689_v34 = vpop.permute.xlu1 %688  ;;  %v687_v40 = vpop.permute.xlu0 %686 }
 0x16d   : > { %v685_v57 = vadd.f32 %v683_v27, %v679_v43  ;;  %v684_v41 = vadd.f32 %v682_v29, %v678_v44  ;;  %v693_v50 = vmul.f32 %v691_v32, %v689_v34  ;;  %v692_v60 = vmul.f32 %v691_v32, %v687_v40 }
 0x16e   : > { %1025 = vrot.lane.b32.xlu1 %v2322_v17, %s1649_s29  ;;  %1023 = vrot.lane.b32.xlu0 %v2326_v18, %s1649_s29 }
 0x16f   : > { %v695_v58 = vadd.f32 %v693_v50, %v685_v57  ;;  %v694_v47 = vadd.f32 %v692_v60, %v684_v41 }
 0x170   : > { %v699_v51 = vpop.permute.xlu1 %698  ;;  %v697_v49 = vpop.permute.xlu0 %696 }
 0x171   : > { %v703_v52 = vmul.f32 %v701_v61, %v699_v51  ;;  %v702_v28 = vmul.f32 %v701_v61, %v697_v49  ;;  %v785_v49 = vstv %s1395_s6  ;;  %s2467_s6 = sld [smem:[#allocation7 + $0x49]] }
 0x172   : > { %1041 = vrot.lane.b32.xlu1 %v2322_v17, %s1650_s7  ;;  %1039 = vrot.lane.b32.xlu0 %v2326_v18, %s1650_s7 }
 0x173   : > { %v705_v55 = vadd.f32 %v703_v52, %v695_v58  ;;  %v704_v26 = vadd.f32 %v702_v28, %v694_v47  ;;  %v775_v58 = vstv %s1394_s5  ;;  %v1141_v52 = vrot.slane %v2113_v31, 3  ;;  %s2465_s5 = sld [smem:[#allocation7 + $0x48]] }
 0x174   : > { %v709_v56 = vpop.permute.xlu1 %708  ;;  %v707_v59 = vpop.permute.xlu0 %706  ;;  %v1140_v28 = vrot.slane %v2360_v5, 3 }
 0x175   : > { %v713_v62 = vmul.f32 %v711_v54, %v709_v56  ;;  %v712_v63 = vmul.f32 %v711_v54, %v707_v59  ;;  %v2420_v31 = vsel %vm647_vm6, %v1141_v52, %v2068_v33 }
 0x176   : > { %1051 = vrot.lane.b32.xlu1 %v2322_v17, %s1651_s16  ;;  %1049 = vrot.lane.b32.xlu0 %v2326_v18, %s1651_s16 }
 0x177   : > { %v715_v1 = vadd.f32 %v713_v62, %v705_v55  ;;  %v714_v2 = vadd.f32 %v712_v63, %v704_v26  ;;  %v800_v26 = vstv %s1396_s8  ;;  %s2470_s8 = sld [smem:[#allocation7 + $0x4a]] }
 0x178   : > { %v727_v7 = vpop.permute.xlu1 %726  ;;  %v725_v45 = vpop.permute.xlu0 %724 }
 0x179   : > { %v731_v9 = vmul.f32 %v729_v0, %v727_v7  ;;  %v730_v12 = vmul.f32 %v729_v0, %v725_v45  ;;  %v810_v0 = vstv %s2400_s19  ;;  %s1415_s19 = sld [smem:[#allocation7 + $0x4b]] }
 0x17a   : > { %1061 = vrot.lane.b32.xlu1 %v2322_v17, %s1652_s17  ;;  %1059 = vrot.lane.b32.xlu0 %v2326_v18, %s1652_s17 }
 0x17b   : > { %v733_v14 = vadd.f32 %v731_v9, %v715_v1  ;;  %v732_v15 = vadd.f32 %v730_v12, %v714_v2  ;;  %v2424_v1 = vsel %vm647_vm6, %v1140_v28, %v1141_v52  ;;  %v826_v12 = vstv %s2402_s24  ;;  %s2473_s24 = sld [smem:[#allocation7 + $0x4c]] }
 0x17c   : > { %v737_v19 = vpop.permute.xlu1 %736  ;;  %v735_v20 = vpop.permute.xlu0 %734 }
 0x17d   : > { %v741_v21 = vmul.f32 %v739_v13, %v737_v19  ;;  %v740_v22 = vmul.f32 %v739_v13, %v735_v20 }
 0x17e   : > { %1076 = vrot.lane.b32.xlu1 %v2373_v16, %s1648_s23  ;;  %1074 = vrot.lane.b32.xlu0 %v2377_v38, %s1648_s23 }
 0x17f   : > { %v743_v48 = vadd.f32 %v741_v21, %v733_v14  ;;  %v742_v53 = vadd.f32 %v740_v22, %v732_v15  ;;  %v828_v21 = vmul.f32 %v826_v12, %v2175_v8 }
 0x180   : > { %v747_v23 = vpop.permute.xlu1 %746  ;;  %v745_v25 = vpop.permute.xlu0 %744 }
 0x181   : > { %v751_v27 = vmul.f32 %v749_v37, %v747_v23  ;;  %v750_v29 = vmul.f32 %v749_v37, %v745_v25  ;;  %v827_v37 = vmul.f32 %v826_v12, %v1941_v46 }
 0x182   : > { %1086 = vrot.lane.b32.xlu1 %v2373_v16, %s1647_s20  ;;  %1084 = vrot.lane.b32.xlu0 %v2377_v38, %s1647_s20 }
 0x183   : > { %v753_v32 = vadd.f32 %v751_v27, %v743_v48  ;;  %v752_v43 = vadd.f32 %v750_v29, %v742_v53 }
 0x184   : > { %v763_v44 = vpop.permute.xlu1 %762  ;;  %v761_v34 = vpop.permute.xlu0 %760 }
 0x185   : > { %v759_v40 = vadd.f32 %v757_v35, %v753_v32  ;;  %v758_v57 = vadd.f32 %v756_v36, %v752_v43  ;;  %v767_v41 = vmul.f32 %v765_v30, %v763_v44  ;;  %v766_v3 = vmul.f32 %v765_v30, %v761_v34 }
 0x186   : > { %1096 = vrot.lane.b32.xlu1 %v2373_v16, %s1649_s29  ;;  %1094 = vrot.lane.b32.xlu0 %v2377_v38, %s1649_s29  ;;  %v846_v44 = vstv %s1401_s26  ;;  %s2481_s26 = sld [smem:[#allocation7 + $0x50]] }
 0x187   : > { %v769_v39 = vadd.f32 %v767_v41, %v759_v40  ;;  %v768_v50 = vadd.f32 %v766_v3, %v758_v57  ;;  %v856_v3 = vstv %s1402_s27  ;;  %s2484_s27 = sld [smem:[#allocation7 + $0x4f]] }
 0x188   : > { %v773_v60 = vpop.permute.xlu1 %772  ;;  %v771_v61 = vpop.permute.xlu0 %770 }
 0x189   : > { %v777_v54 = vmul.f32 %v775_v58, %v773_v60  ;;  %v776_v55 = vmul.f32 %v775_v58, %v771_v61  ;;  %v871_v60 = vstv %s1403_s30  ;;  %s1421_s30 = sld [smem:[#allocation7 + $0x51]] }
 0x18a   : > { %1112 = vrot.lane.b32.xlu1 %v2373_v16, %s1650_s7  ;;  %1110 = vrot.lane.b32.xlu0 %v2377_v38, %s1650_s7 }
 0x18b   : > { %v779_v2 = vadd.f32 %v777_v54, %v769_v39  ;;  %v778_v4 = vadd.f32 %v776_v55, %v768_v50 }
 0x18c   : > { %v783_v47 = vpop.permute.xlu1 %782  ;;  %v781_v51 = vpop.permute.xlu0 %780 }
 0x18d   : > { %v787_v62 = vmul.f32 %v785_v49, %v783_v47  ;;  %v786_v63 = vmul.f32 %v785_v49, %v781_v51 }
 0x18e   : > { %1122 = vrot.lane.b32.xlu1 %v2373_v16, %s1651_s16  ;;  %1120 = vrot.lane.b32.xlu0 %v2377_v38, %s1651_s16 }
 0x18f   : > { %v789_v13 = vadd.f32 %v787_v62, %v779_v2  ;;  %v788_v14 = vadd.f32 %v786_v63, %v778_v4  ;;  %v897_v63 = vstv %s2448_s28  ;;  %s1423_s28 = sld [smem:[#allocation7 + $0x53]] }
 0x190   : > { %v798_v56 = vpop.permute.xlu1 %797  ;;  %v796_v59 = vpop.permute.xlu0 %795 }
 0x191   : > { %v802_v6 = vmul.f32 %v800_v26, %v798_v56  ;;  %v801_v7 = vmul.f32 %v800_v26, %v796_v59 }
 0x192   : > { %1132 = vrot.lane.b32.xlu1 %v2373_v16, %s1652_s17  ;;  %1130 = vrot.lane.b32.xlu0 %v2377_v38, %s1652_s17 }
 0x193   : > { %v804_v33 = vadd.f32 %v802_v6, %v789_v13  ;;  %v803_v20 = vadd.f32 %v801_v7, %v788_v14  ;;  %v899_v14 = vmul.f32 %v897_v63, %v2232_v10 }
 0x194   : > { %v808_v45 = vpop.permute.xlu1 %807  ;;  %v806_v9 = vpop.permute.xlu0 %805 }
 0x195   : > { %v812_v15 = vmul.f32 %v810_v0, %v808_v45  ;;  %v811_v19 = vmul.f32 %v810_v0, %v806_v9 }
 0x196   : > { %1147 = vrot.lane.b32.xlu1 %v2420_v31, %s1648_s23  ;;  %1145 = vrot.lane.b32.xlu0 %v2424_v1, %s1648_s23  ;;  %s1400_s23 = sld [smem:[#allocation7 + $0x3c]] }
 0x197   : > { %v814_v48 = vadd.f32 %v812_v15, %v804_v33  ;;  %v813_v53 = vadd.f32 %v811_v19, %v803_v20  ;;  %v898_v15 = vmul.f32 %v897_v63, %v2237_v11 }
 0x198   : > { %v818_v22 = vpop.permute.xlu1 %817  ;;  %v816_v42 = vpop.permute.xlu0 %815 }
 0x199   : > { %v822_v23 = vmul.f32 %v820_v24, %v818_v22  ;;  %v821_v25 = vmul.f32 %v820_v24, %v816_v42 }
 0x19a   : > { %1157 = vrot.lane.b32.xlu1 %v2420_v31, %s1647_s20  ;;  %1155 = vrot.lane.b32.xlu0 %v2424_v1, %s1647_s20  ;;  %s2446_s20 = sld [smem:[#allocation7 + $0x40]] }
 0x19b   : > { %v824_v35 = vadd.f32 %v822_v23, %v814_v48  ;;  %v823_v27 = vadd.f32 %v821_v25, %v813_v53 }
 0x19c   : > { %v834_v36 = vpop.permute.xlu1 %833  ;;  %v832_v29 = vpop.permute.xlu0 %831  ;;  %v836_v43 = vstv %s1400_s23  ;;  %s2479_s23 = sld [smem:[#allocation7 + $0x4e]] }
 0x19d   : > { %v830_v8 = vadd.f32 %v828_v21, %v824_v35  ;;  %v829_v30 = vadd.f32 %v827_v37, %v823_v27  ;;  %v838_v57 = vmul.f32 %v836_v43, %v834_v36  ;;  %v837_v41 = vmul.f32 %v836_v43, %v832_v29 }
 0x19e   : > { %1167 = vrot.lane.b32.xlu1 %v2420_v31, %s1649_s29  ;;  %1165 = vrot.lane.b32.xlu0 %v2424_v1, %s1649_s29  ;;  %s2454_s29 = sld [smem:[#allocation7 + $0x41]] }
 0x19f   : > { %v840_v47 = vadd.f32 %v838_v57, %v830_v8  ;;  %v839_v51 = vadd.f32 %v837_v41, %v829_v30 }
 0x1a0   : > { %v844_v46 = vpop.permute.xlu1 %843  ;;  %v842_v32 = vpop.permute.xlu0 %841  ;;  %v881_v28 = vstv %s2446_s20  ;;  %s1422_s20 = sld [smem:[#allocation7 + $0x52]] }
 0x1a1   : > { %v848_v39 = vmul.f32 %v846_v44, %v844_v46  ;;  %v847_v50 = vmul.f32 %v846_v44, %v842_v32 }
 0x1a2   : > { %1183 = vrot.lane.b32.xlu1 %v2420_v31, %s1650_s7  ;;  %1181 = vrot.lane.b32.xlu0 %v2424_v1, %s1650_s7  ;;  %s1407_s7 = sld [smem:[#allocation7 + $0x43]] }
 0x1a3   : > { %v850_v54 = vadd.f32 %v848_v39, %v840_v47  ;;  %v849_v55 = vadd.f32 %v847_v50, %v839_v51  ;;  %v947_v50 = vstv %s1411_s4  ;;  %s1429_s4 = sld [smem:[#allocation7 + $0x59]] }
 0x1a4   : > { %v854_v34 = vpop.permute.xlu1 %853  ;;  %v852_v40 = vpop.permute.xlu0 %851  ;;  %v891_v7 = vstv %s2454_s29  ;;  %s1424_s29 = sld [smem:[#allocation7 + $0x54]] }
 0x1a5   : > { %v858_v49 = vmul.f32 %v856_v3, %v854_v34  ;;  %v857_v52 = vmul.f32 %v856_v3, %v852_v40  ;;  %v937_v40 = vstv %s1410_s3  ;;  %s1428_s3 = sld [smem:[#allocation7 + $0x58]] }
 0x1a6   : > { %1193 = vrot.lane.b32.xlu1 %v2420_v31, %s1651_s16  ;;  %1191 = vrot.lane.b32.xlu0 %v2424_v1, %s1651_s16  ;;  %s1408_s16 = sld [smem:[#allocation7 + $0x44]] }
 0x1a7   : > { %v860_v0 = vadd.f32 %v858_v49, %v850_v54  ;;  %v859_v2 = vadd.f32 %v857_v52, %v849_v55  ;;  %v957_v52 = vstv %s2465_s5  ;;  %s1430_s5 = sld [smem:[#allocation7 + $0x5a]] }
 0x1a8   : > { %v869_v61 = vpop.permute.xlu1 %868  ;;  %v867_v58 = vpop.permute.xlu0 %866  ;;  %v907_v10 = vstv %s1407_s7  ;;  %s1425_s7 = sld [smem:[#allocation7 + $0x55]] }
 0x1a9   : > { %v873_v26 = vmul.f32 %v871_v60, %v869_v61  ;;  %v872_v56 = vmul.f32 %v871_v60, %v867_v58 }
 0x1aa   : > { %1203 = vrot.lane.b32.xlu1 %v2420_v31, %s1652_s17  ;;  %1201 = vrot.lane.b32.xlu0 %v2424_v1, %s1652_s17  ;;  %s1409_s17 = sld [smem:[#allocation7 + $0x45]] }
 0x1ab   : > { %v875_v45 = vadd.f32 %v873_v26, %v860_v0  ;;  %v874_v9 = vadd.f32 %v872_v56, %v859_v2 }
 0x1ac   : > { %v879_v59 = vpop.permute.xlu1 %878  ;;  %v877_v62 = vpop.permute.xlu0 %876  ;;  %v917_v29 = vstv %s1408_s16  ;;  %s2492_s16 = sld [smem:[#allocation7 + $0x57]] }
 0x1ad   : > { %v883_v4 = vmul.f32 %v881_v28, %v879_v59  ;;  %v882_v6 = vmul.f32 %v881_v28, %v877_v62 }
 0x1af   : > { %v885_v19 = vadd.f32 %v883_v4, %v875_v45  ;;  %v884_v24 = vadd.f32 %v882_v6, %v874_v9  ;;  %v963_v4 = vstv %s2467_s6  ;;  %s1431_s6 = sld [smem:[#allocation7 + $0x5b]] }
 0x1b0   : > { %v889_v12 = vpop.permute.xlu1 %888  ;;  %v887_v13 = vpop.permute.xlu0 %886  ;;  %v927_v46 = vstv %s1409_s17  ;;  %s2494_s17 = sld [smem:[#allocation7 + $0x56]] }
 0x1b1   : > { %v893_v33 = vmul.f32 %v891_v7, %v889_v12  ;;  %v892_v20 = vmul.f32 %v891_v7, %v887_v13 }
 0x1b3   : > { %v895_v21 = vadd.f32 %v893_v33, %v885_v19  ;;  %v894_v22 = vadd.f32 %v892_v20, %v884_v24  ;;  %v964_v19 = vmul.f32 %v2360_v5, %v963_v4  ;;  %v973_v24 = vstv %s2470_s8  ;;  %s1432_s8 = sld [smem:[#allocation7 + $0x5c]] }
 0x1b4   : > { %v905_v37 = vpop.permute.xlu1 %904  ;;  %v903_v42 = vpop.permute.xlu0 %902  ;;  %v983_v33 = vstv %s1415_s19  ;;  %v1008_v5 = vstv %s2475_s25  ;;  %s2500_s19 = sld [smem:[#allocation7 + $0x5e]]  ;;  %s1435_s25 = sld [smem:[#allocation7 + $0x5f]] }
 0x1b5   : > { %v901_v48 = vadd.f32 %v899_v14, %v895_v21  ;;  %v900_v53 = vadd.f32 %v898_v15, %v894_v22  ;;  %v909_v8 = vmul.f32 %v907_v10, %v905_v37  ;;  %v908_v30 = vmul.f32 %v907_v10, %v903_v42  ;;  %v1524_v14 = vld [vmem:[#allocation2 + $0x20] sm:$0xff] }
 0x1b6   : > { %v965_v15 = vmul.f32 %v1524_v14, %v963_v4 }
 0x1b7   : > { %v911_v57 = vadd.f32 %v909_v8, %v901_v48  ;;  %v910_v41 = vadd.f32 %v908_v30, %v900_v53  ;;  %v993_v53 = vstv %s2473_s24  ;;  %v1018_v8 = vstv %s2479_s23  ;;  %s2502_s24 = sld [smem:[#allocation7 + $0x5d]]  ;;  %s1436_s23 = sld [smem:[#allocation7 + $0x60]] }
 0x1b8   : > { %v915_v23 = vpop.permute.xlu1 %914  ;;  %v913_v25 = vpop.permute.xlu0 %912 }
 0x1b9   : > { %v919_v44 = vmul.f32 %v917_v29, %v915_v23  ;;  %v918_v34 = vmul.f32 %v917_v29, %v913_v25 }
 0x1bb   : > { %v921_v58 = vadd.f32 %v919_v44, %v911_v57  ;;  %v920_v47 = vadd.f32 %v918_v34, %v910_v41 }
 0x1bc   : > { %v925_v35 = vpop.permute.xlu1 %924  ;;  %v923_v27 = vpop.permute.xlu0 %922 }
 0x1bd   : > { %v929_v3 = vmul.f32 %v927_v46, %v925_v35  ;;  %v928_v39 = vmul.f32 %v927_v46, %v923_v27 }
 0x1bf   : > { %v931_v28 = vadd.f32 %v929_v3, %v921_v58  ;;  %v930_v54 = vadd.f32 %v928_v39, %v920_v47 }
 0x1c0   : > { %v935_v11 = vpop.permute.xlu1 %934  ;;  %v933_v36 = vpop.permute.xlu0 %932 }
 0x1c1   : > { %v939_v51 = vmul.f32 %v937_v40, %v935_v11  ;;  %v938_v49 = vmul.f32 %v937_v40, %v933_v36  ;;  %v1034_v40 = vstv %s2481_s26  ;;  %s1437_s26 = sld [smem:[#allocation7 + $0x61]] }
 0x1c3   : > { %v941_v62 = vadd.f32 %v939_v51, %v931_v28  ;;  %v940_v63 = vadd.f32 %v938_v49, %v930_v54  ;;  %v1036_v51 = vmul.f32 %v1034_v40, %v2322_v17  ;;  %v1035_v49 = vmul.f32 %v1034_v40, %v2326_v18 }
 0x1c4   : > { %v945_v32 = vpop.permute.xlu1 %944  ;;  %v943_v43 = vpop.permute.xlu0 %942  ;;  %v1054_v17 = vstv %s1422_s20 }
 0x1c5   : > { %v949_v55 = vmul.f32 %v947_v50, %v945_v32  ;;  %v948_v26 = vmul.f32 %v947_v50, %v943_v43  ;;  %v1028_v50 = vstv %s2484_s27  ;;  %s1334_s27 = sshll.u32 %s1798_s14, 4 }
 0x1c6   : > { %s175_s20 = scalar_lea.vmem [#allocation8], %s1334_s27 }
 0x1c7   : > { %v951_v6 = vadd.f32 %v949_v55, %v941_v62  ;;  %v950_v7 = vadd.f32 %v948_v26, %v940_v63 }
 0x1c8   : > { %v955_v60 = vpop.permute.xlu1 %954  ;;  %v953_v61 = vpop.permute.xlu0 %952 }
 0x1c9   : > { %v959_v0 = vmul.f32 %v957_v52, %v955_v60  ;;  %v958_v2 = vmul.f32 %v957_v52, %v953_v61 }
 0x1cb   : > { %v961_v12 = vadd.f32 %v959_v0, %v951_v6  ;;  %v960_v13 = vadd.f32 %v958_v2, %v950_v7  ;;  %v1044_v6 = vstv %s1421_s30  ;;  %s1446_s30 = sshll.u32 %s1692_s13, 8 }
 0x1cc   : > { %v971_v56 = vpop.permute.xlu1 %970  ;;  %v969_v59 = vpop.permute.xlu0 %968 }
 0x1cd   : > { %v967_v22 = vadd.f32 %v965_v15, %v961_v12  ;;  %v975_v37 = vmul.f32 %v973_v24, %v971_v56  ;;  %v966_v42 = vadd.f32 %v964_v19, %v960_v13  ;;  %v974_v48 = vmul.f32 %v973_v24, %v969_v59 }
 0x1ce   : > { %v1064_v12 = vstv %s1423_s28  ;;  %v1079_v15 = vstv %s1424_s29  ;;  %s1239_s28 = sshll.u32 %s175_s20, 4  ;;  %s2515_s28 = int_to_ptr.vmem [resolvable:$true] %s1239_s28 }
 0x1cf   : > { %v977_v10 = vadd.f32 %v975_v37, %v967_v22  ;;  %v976_v11 = vadd.f32 %v974_v48, %v966_v42  ;;  %v1089_v37 = vstv %s1425_s7  ;;  %s1570_s13 = scalar_lea.vmem %s2515_s28, 256 }
 0x1d0   : > { %v981_v45 = vpop.permute.xlu1 %980  ;;  %v979_v9 = vpop.permute.xlu0 %978  ;;  %p1571_p13 = scmp.ne.s32.totalorder %s2515_s28, %s1570_s13 }
 0x1d1   : > { %v985_v23 = vmul.f32 %v983_v33, %v981_v45  ;;  %v984_v25 = vmul.f32 %v983_v33, %v979_v9 }
 0x1d2   : > { %p1572_p8 = pnand %p1571_p13, %p2577_p12 }
 0x1d3   : > { %v987_v30 = vadd.f32 %v985_v23, %v977_v10  ;;  %v986_v46 = vadd.f32 %v984_v25, %v976_v11 }
 0x1d4   : > { %v991_v20 = vpop.permute.xlu1 %990  ;;  %v989_v21 = vpop.permute.xlu0 %988  ;;  %p1573_p9 = pneg %p1572_p8 }
 0x1d5   : > { %v995_v36 = vmul.f32 %v993_v53, %v991_v20  ;;  %v994_v29 = vmul.f32 %v993_v53, %v989_v21 }
 0x1d7   : > { %v997_v57 = vadd.f32 %v995_v36, %v987_v30  ;;  %v996_v41 = vadd.f32 %v994_v29, %v986_v46  ;;  %v1099_v29 = vstv %s2494_s17  ;;  %s1226_s17 = scalar_lea.sflag [#allocation5], %s1798_s14 }
 0x1d8   : > { %v1006_v35 = vpop.permute.xlu1 %1005  ;;  %v1004_v27 = vpop.permute.xlu0 %1003 }
 0x1d9   : > { %v1010_v32 = vmul.f32 %v1008_v5, %v1006_v35  ;;  %v1009_v43 = vmul.f32 %v1008_v5, %v1004_v27  ;;  %v1105_v35 = vstv %s2492_s16  ;;  %s2513_s16 = scalar_lea.hbm %s2563_s2, %s1446_s30 }
 0x1db   : > { %v1012_v60 = vadd.f32 %v1010_v32, %v997_v57  ;;  %v1011_v61 = vadd.f32 %v1009_v43, %v996_v41  ;;  %v1107_v43 = vmul.f32 %v1105_v35, %v2373_v16  ;;  %v1125_v16 = vstv %s1429_s4 }
 0x1dc   : > { %v1016_v44 = vpop.permute.xlu1 %1015  ;;  %v1014_v34 = vpop.permute.xlu0 %1013 }
 0x1dd   : > { %v1020_v3 = vmul.f32 %v1018_v8, %v1016_v44  ;;  %v1019_v39 = vmul.f32 %v1018_v8, %v1014_v34  ;;  %v1106_v44 = vmul.f32 %v1105_v35, %v2377_v38 }
 0x1df   : > { %v1022_v52 = vadd.f32 %v1020_v3, %v1012_v60  ;;  %v1021_v28 = vadd.f32 %v1019_v39, %v1011_v61 }
 0x1e0   : > { %v1026_v58 = vpop.permute.xlu1 %1025  ;;  %v1024_v47 = vpop.permute.xlu0 %1023 }
 0x1e1   : > { %v1030_v54 = vmul.f32 %v1028_v50, %v1026_v58  ;;  %v1029_v55 = vmul.f32 %v1028_v50, %v1024_v47 }
 0x1e3   : > { %v1032_v26 = vadd.f32 %v1030_v54, %v1022_v52  ;;  %v1031_v56 = vadd.f32 %v1029_v55, %v1021_v28  ;;  %v1135_v55 = vstv %s1430_s5 }
 0x1e4   : > { %v1042_v59 = vpop.permute.xlu1 %1041  ;;  %v1040_v62 = vpop.permute.xlu0 %1039 }
 0x1e5   : > { %v1038_v63 = vadd.f32 %v1036_v51, %v1032_v26  ;;  %v1037_v0 = vadd.f32 %v1035_v49, %v1031_v56  ;;  %v1046_v45 = vmul.f32 %v1044_v6, %v1042_v59  ;;  %v1045_v9 = vmul.f32 %v1044_v6, %v1040_v62 }
 0x1e6   : > { %v1115_v49 = vstv %s1428_s3  ;;  %v1150_v59 = vstv %s1431_s6  ;;  %s1653_s3 = smov [#allocation8]  }
 0x1e7   : > { %v1048_v33 = vadd.f32 %v1046_v45, %v1038_v63  ;;  %v1047_v20 = vadd.f32 %v1045_v9, %v1037_v0  ;;  %s1574_s4 = sshll.u32 %s1653_s3, 4  ;;  %s1575_s4 = int_to_ptr.vmem [resolvable:$false] %s1574_s4 }
 0x1e8   : > { %v1052_v2 = vpop.permute.xlu1 %1051  ;;  %v1050_v4 = vpop.permute.xlu0 %1049  ;;  %s1576_s5 = scalar_lea.vmem %s1575_s4, 512  ;;  %p1577_p10 = scmp.lt.s32.totalorder %s2515_s28, %s1575_s4 }
 0x1e9   : > { %v1056_v13 = vmul.f32 %v1054_v17, %v1052_v2  ;;  %v1055_v14 = vmul.f32 %v1054_v17, %v1050_v4  ;;  %v1160_v17 = vstv %s1432_s8  ;;  %p1578_p1 = scmp.lt.s32.totalorder %s1576_s5, %s1570_s13 }
 0x1eb   : > { %v1058_v42 = vadd.f32 %v1056_v13, %v1048_v33  ;;  %v1057_v48 = vadd.f32 %v1055_v14, %v1047_v20  ;;  %v1176_v14 = vstv %s2500_s19  ;;  %v1170_v20 = vstv %s2502_s24  ;;  %p1579_p4 = por %p1578_p1, %p1577_p10 }
 0x1ec   : > { %v1062_v18 = vpop.permute.xlu1 %1061  ;;  %v1060_v7 = vpop.permute.xlu0 %1059 }
 0x1ed   : > { %v1066_v21 = vmul.f32 %v1064_v12, %v1062_v18  ;;  %v1065_v22 = vmul.f32 %v1064_v12, %v1060_v7  ;;  %p1580_p11 = pnand %p1579_p4, %p1573_p9 }
 0x1ef   : > { %v1068_v27 = vadd.f32 %v1066_v21, %v1058_v42  ;;  %v1067_v10 = vadd.f32 %v1065_v22, %v1057_v48  ;;  %v1178_v48 = vmul.f32 %v1176_v14, %v2420_v31 }
 0x1f0   : > { %v1077_v19 = vpop.permute.xlu1 %1076  ;;  %v1075_v24 = vpop.permute.xlu0 %1074 }
 0x1f1   : > { %v1081_v53 = vmul.f32 %v1079_v15, %v1077_v19  ;;  %v1080_v23 = vmul.f32 %v1079_v15, %v1075_v24 }
 0x1f3   : > { %v1083_v8 = vadd.f32 %v1081_v53, %v1068_v27  ;;  %v1082_v30 = vadd.f32 %v1080_v23, %v1067_v10  ;;  %v1177_v53 = vmul.f32 %v1176_v14, %v2424_v1  ;;  %v1206_v1 = vstv %s1437_s26 }
 0x1f4   : > { %v1087_v25 = vpop.permute.xlu1 %1086  ;;  %v1085_v5 = vpop.permute.xlu0 %1084 }
 0x1f5   : > { %v1091_v11 = vmul.f32 %v1089_v37, %v1087_v25  ;;  %v1090_v36 = vmul.f32 %v1089_v37, %v1085_v5 }
 0x1f7   : > { %v1093_v34 = vadd.f32 %v1091_v11, %v1083_v8  ;;  %v1092_v40 = vadd.f32 %v1090_v36, %v1082_v30  ;;  %v1186_v11 = vstv %s1435_s25 }
 0x1f8   : > { %v1097_v46 = vpop.permute.xlu1 %1096  ;;  %v1095_v32 = vpop.permute.xlu0 %1094 }
 0x1f9   : > { %v1101_v57 = vmul.f32 %v1099_v29, %v1097_v46  ;;  %v1100_v41 = vmul.f32 %v1099_v29, %v1095_v32  ;;  %v1196_v46 = vstv %s1436_s23 }
 0x1fb   : > { %v1103_v3 = vadd.f32 %v1101_v57, %v1093_v34  ;;  %v1102_v39 = vadd.f32 %v1100_v41, %v1092_v40 }
 0x1fc   : > { %v1113_v50 = vpop.permute.xlu1 %1112  ;;  %v1111_v60 = vpop.permute.xlu0 %1110 }
 0x1fd   : > { %v1109_v61 = vadd.f32 %v1107_v43, %v1103_v3  ;;  %v1108_v58 = vadd.f32 %v1106_v44, %v1102_v39  ;;  %v1117_v28 = vmul.f32 %v1115_v49, %v1113_v50  ;;  %v1116_v54 = vmul.f32 %v1115_v49, %v1111_v60 }
 0x1ff   : > { %v1119_v0 = vadd.f32 %v1117_v28, %v1109_v61  ;;  %v1118_v2 = vadd.f32 %v1116_v54, %v1108_v58 }
 0x200   : > { %v1123_v47 = vpop.permute.xlu1 %1122  ;;  %v1121_v51 = vpop.permute.xlu0 %1120 }
 0x201   : > { %v1127_v26 = vmul.f32 %v1125_v16, %v1123_v47  ;;  %v1126_v56 = vmul.f32 %v1125_v16, %v1121_v51 }
 0x203   : > { %v1129_v18 = vadd.f32 %v1127_v26, %v1119_v0  ;;  %v1128_v7 = vadd.f32 %v1126_v56, %v1118_v2 }
 0x204   : > { %v1133_v38 = vpop.permute.xlu1 %1132  ;;  %v1131_v52 = vpop.permute.xlu0 %1130 }
 0x205   : > { %v1137_v4 = vmul.f32 %v1135_v55, %v1133_v38  ;;  %v1136_v6 = vmul.f32 %v1135_v55, %v1131_v52 }
 0x207   : > { %v1139_v15 = vadd.f32 %v1137_v4, %v1129_v18  ;;  %v1138_v19 = vadd.f32 %v1136_v6, %v1128_v7 }
 0x208   : > { %v1148_v62 = vpop.permute.xlu1 %1147  ;;  %v1146_v63 = vpop.permute.xlu0 %1145 }
 0x209   : > { %v1152_v45 = vmul.f32 %v1150_v59, %v1148_v62  ;;  %v1151_v9 = vmul.f32 %v1150_v59, %v1146_v63 }
 0x20b   : > { %v1154_v21 = vadd.f32 %v1152_v45, %v1139_v15  ;;  %v1153_v22 = vadd.f32 %v1151_v9, %v1138_v19 }
 0x20c   : > { %v1158_v12 = vpop.permute.xlu1 %1157  ;;  %v1156_v13 = vpop.permute.xlu0 %1155 }
 0x20d   : > { %v1162_v24 = vmul.f32 %v1160_v17, %v1158_v12  ;;  %v1161_v33 = vmul.f32 %v1160_v17, %v1156_v13 }
 0x20f   : > { %v1164_v23 = vadd.f32 %v1162_v24, %v1154_v21  ;;  %v1163_v25 = vadd.f32 %v1161_v33, %v1153_v22 }
 0x210   : > { %v1168_v37 = vpop.permute.xlu1 %1167  ;;  %v1166_v42 = vpop.permute.xlu0 %1165 }
 0x211   : > { %v1172_v5 = vmul.f32 %v1170_v20, %v1168_v37  ;;  %v1171_v35 = vmul.f32 %v1170_v20, %v1166_v42 }
 0x213   : > { %v1174_v27 = vadd.f32 %v1172_v5, %v1164_v23  ;;  %v1173_v10 = vadd.f32 %v1171_v35, %v1163_v25 }
 0x214   : > { %v1184_v36 = vpop.permute.xlu1 %1183  ;;  %v1182_v29 = vpop.permute.xlu0 %1181 }
 0x215   : > { %v1180_v8 = vadd.f32 %v1178_v48, %v1174_v27  ;;  %v1179_v30 = vadd.f32 %v1177_v53, %v1173_v10  ;;  %v1188_v32 = vmul.f32 %v1186_v11, %v1184_v36  ;;  %v1187_v43 = vmul.f32 %v1186_v11, %v1182_v29 }
 0x217   : > { %v1190_v57 = vadd.f32 %v1188_v32, %v1180_v8  ;;  %v1189_v41 = vadd.f32 %v1187_v43, %v1179_v30 }
 0x218   : > { %v1194_v44 = vpop.permute.xlu1 %1193  ;;  %v1192_v34 = vpop.permute.xlu0 %1191 }
 0x219   : > { %v1198_v31 = vmul.f32 %v1196_v46, %v1194_v44  ;;  %v1197_v40 = vmul.f32 %v1196_v46, %v1192_v34 }
 0x21b   : > { %v1200_v50 = vadd.f32 %v1198_v31, %v1190_v57  ;;  %v1199_v60 = vadd.f32 %v1197_v40, %v1189_v41 }
 0x21c   : > { %v1204_v3 = vpop.permute.xlu1 %1203  ;;  %v1202_v39 = vpop.permute.xlu0 %1201 }
 0x21d   : > { %v1208_v61 = vmul.f32 %v1206_v1, %v1204_v3  ;;  %v1207_v58 = vmul.f32 %v1206_v1, %v1202_v39 }
 0x21f   : > { %v1210_v47 = vadd.f32 %v1208_v61, %v1200_v50  ;;  %v1209_v51 = vadd.f32 %v1207_v58, %v1199_v60 }
 0x221   : > { %v1439_v49 = vmul.f32 -1.442695, %v1210_v47  ;;  %v1438_v16 = vmul.f32 -1.442695, %v1209_v51 }
 0x223   : > { %1515 = vpow2.f32 %v1439_v49 }
 0x224   : > { %1517 = vpow2.f32 %v1438_v16 }
 0x22d   : > { %v1516_v38 = vpop.eup %1515 }
 0x22e   : > { %v1518_v52 = vpop.eup %1517  ;;  %v1218_v28 = vadd.f32 1.0, %v1516_v38 }
 0x22f   : > { %v1217_v54 = vadd.f32 1.0, %v1518_v52 }
 0x230   : > { %1519 = vrcp.f32 %v1218_v28 }
 0x231   : > { %1521 = vrcp.f32 %v1217_v54 }
 0x23a   : > { %v1520_v55 = vpop.eup %1519 }
 0x23b   : > { %v1522_v26 = vpop.eup %1521  ;;  %1224 = vst.msk [vmem:[%s175_s20 + $0x8] sm:$0xff] %vm207_vm0, %v1520_v55 }
 0x23c   : > { %1223 = vst.msk [vmem:[%s175_s20] sm:$0xff] %vm207_vm0, %v1522_v26 }
 0x23d   : > { %1583 = shalt.err (!%p1580_p11)
}
 0x23e   : > { %s1584_s6 = scalar_lea.hbm %s2513_s16, 256  ;;  %s1588_s24 = scalar_lea.hbm %s2563_s2, 512 }
 0x23f   : > { %p1585_p0 = scmp.ne.s32.totalorder %s2513_s16, %s1584_s6  ;;  %p1589_p6 = scmp.lt.u32.totalorder %s2513_s16, %s2563_s2 }
 0x240   : > { %p1590_p5 = scmp.lt.u32.totalorder %s1588_s24, %s1584_s6  ;;  %p1592_p13 = scmp.lt.u32.totalorder %s1584_s6, %s2513_s16 }
 0x241   : > { %p1586_p2 = pnand %p1585_p0, %p2577_p12 }
 0x242   : > { %p1591_p3 = por %p1590_p5, %p1589_p6 }
 0x243   : > { %p1587_p7 = pneg %p1586_p2 }
 0x244   : > { %p1593_p8 = por %p1592_p13, %p1591_p3 }
 0x246   : > { %p1594_p9 = pnand %p1593_p8, %p1587_p7 }
 0x248   : > { %1597 = shalt.err (!%p1594_p9)
}
 0x249   : > { %s1654_s26 = smov 128   ;;  %s1655_s27 = smov 8  }
 0x24a   : > { %1453 = dma.vmem_to_hbm [thread:$0]  (%p2577_p12), %s2515_s28, 256, %s2513_s16, %s1226_s17, %s1654_s26, %s1654_s26, %s1655_s27  }
 0x24b PF: > { %s1254_s30 = sand.u32 1, %s1628_s9   ;;  %p2578_p10 = scmp.ne.s32.totalorder %s2570_s22, 0 }
 0x24c   : > { %p2579_p1 = scmp.ge.s32.totalorder %s1640_s12, 2  ;;  %s1255_s20 = scalar_lea.sflag [#allocation5], %s1254_s30 }
 0x24e   : > { %p1464_p4 = pnand %p2579_p1, %p2578_p10 }
 0x250   : > { %1623 = dma.done.wait (!%p1464_p4), %s1255_s20, 256  }
 0x251   : > { %1625 = vsyncadd (!%p1464_p4), %s1255_s20, 4294967040  ;;  %p16_p11 = scmp.ge.s32.totalorder %s1696_s15, 4   ;;  %s2580_s9 = smov %s1632_s10 }
 0x252   : > { %s2581_s10 = smov %s1636_s11  ;;  %s2582_s11 = smov %s1708_s18 }
 0x253   : > { %s2583_s12 = smov %s1696_s15  ;;  %18 = sbr.rel (!%p16_p11) target bundleno = 6 (0x6), region = 82 }
 0x25a   :  { %1260 = vsyncpa [#allocation4], 1 }
 0x25b   :  { %1262 = vsyncpa [#allocation4 + $0x1], 1 }
 0x25c   :  { %1263 = vsyncpa [#allocation5], 1 }
 0x25d   :  { %1265 = vsyncpa [#allocation5 + $0x1], 1 }
 0x25e   :  { %1266 = vsyncpa [#allocation6], 1 }
 0x25f   :  { %1268 = vsyncpa [#allocation6 + $0x1], 1 }

</bundles_post_ra>
